<compile_context>
chip_gen: v5e
topology: v5e:2x2
jax: 0.10.0
libtpu: 0.0.40
codegen_flags: <defaults>
</compile_context>

<pallas_src>
import math
import jax
import jax.numpy as jnp
from jax.experimental import pallas as pl
from jax.experimental.pallas import tpu as pltpu


def step_embedding_kernel(steps_ref, freqs_ref, w1_ref, b1_ref, w2_ref, b2_ref,
                          out_ref):
    steps = steps_ref[...]                    # (Bt, 1)      f32
    freqs = freqs_ref[...]                    # (1, half)    f32

    # sinusoidal embedding (EUP sin/cos; lane-dense (Bt, dim_in) result)
    emb = steps * freqs                       # (Bt, half)
    x = jnp.concatenate([jnp.sin(emb), jnp.cos(emb)], axis=1)   # (Bt, dim_in)

    # fc_t1 + swish
    h = jnp.dot(x, w1_ref[...], preferred_element_type=jnp.float32) + b1_ref[...]
    h = h * jax.nn.sigmoid(h)                 # (Bt, hidden)

    # fc_t2 + swish
    o = jnp.dot(h, w2_ref[...], preferred_element_type=jnp.float32) + b2_ref[...]
    out_ref[...] = (o * jax.nn.sigmoid(o)).astype(out_ref.dtype)   # (Bt, dim_out)


def make_params(key, dim_in, hidden, dim_out):
    k1, k2, k3, k4 = jax.random.split(key, 4)
    return dict(
        w1=jax.random.normal(k1, (hidden, dim_in), jnp.float32) / math.sqrt(dim_in),
        b1=jax.random.normal(k2, (hidden,), jnp.float32) * 0.01,
        w2=jax.random.normal(k3, (dim_out, hidden), jnp.float32) / math.sqrt(hidden),
        b2=jax.random.normal(k4, (dim_out,), jnp.float32) * 0.01,
    )


def step_embedding_pallas(steps, params, *, dim_in, batch_tile=8):
    B = steps.shape[0]
    half = dim_in // 2
    hidden = params["w1"].shape[0]
    dim_out = params["w2"].shape[0]
    assert B % batch_tile == 0, "batch must be divisible by the batch tile"

    # constant frequency vector (hoisted out of the kernel, computed once)
    scale = math.log(10000.0) / (half - 1)
    freqs = jnp.exp(jnp.arange(half, dtype=jnp.float32) * -scale).reshape(1, half)

    steps = steps.reshape(B, 1).astype(jnp.float32)

    # repack nn.Linear weights for row-major (x @ W) matmuls
    w1 = params["w1"].T.astype(jnp.float32)            # (dim_in, hidden)
    b1 = params["b1"].reshape(1, hidden).astype(jnp.float32)
    w2 = params["w2"].T.astype(jnp.float32)            # (hidden, dim_out)
    b2 = params["b2"].reshape(1, dim_out).astype(jnp.float32)

    grid_spec = pltpu.PrefetchScalarGridSpec(
        num_scalar_prefetch=0,
        grid=(B // batch_tile,),
        in_specs=[
            pl.BlockSpec((batch_tile, 1), lambda b: (b, 0)),      # steps tile
            pl.BlockSpec((1, half), lambda b: (0, 0)),            # freqs (resident)
            pl.BlockSpec((dim_in, hidden), lambda b: (0, 0)),     # W1 (resident)
            pl.BlockSpec((1, hidden), lambda b: (0, 0)),          # b1
            pl.BlockSpec((hidden, dim_out), lambda b: (0, 0)),    # W2 (resident)
            pl.BlockSpec((1, dim_out), lambda b: (0, 0)),         # b2
        ],
        out_specs=pl.BlockSpec((batch_tile, dim_out), lambda b: (b, 0)),
    )

    return pl.pallas_call(
        step_embedding_kernel,
        out_shape=jax.ShapeDtypeStruct((B, dim_out), jnp.float32),
        grid_spec=grid_spec,
        compiler_params=pltpu.CompilerParams(
            dimension_semantics=("parallel",)),
    )(steps, freqs, w1, b1, w2, b2)


def step_embedding_reference(steps, params, *, dim_in):
    # Pure-JAX mirror of the PyTorch forward, for validation.
    half = dim_in // 2
    scale = math.log(10000.0) / (half - 1)
    freqs = jnp.exp(jnp.arange(half, dtype=jnp.float32) * -scale)
    emb = steps.reshape(-1, 1).astype(jnp.float32) * freqs[None, :]
    x = jnp.concatenate([jnp.sin(emb), jnp.cos(emb)], axis=1)
    h = jnp.dot(x, params["w1"].T, precision=jax.lax.Precision.HIGHEST) + params["b1"]
    h = h * jax.nn.sigmoid(h)
    o = jnp.dot(h, params["w2"].T, precision=jax.lax.Precision.HIGHEST) + params["b2"]
    return o * jax.nn.sigmoid(o)


if __name__ == "__main__":
    # lco['diffusion_vocoder'] step-embedding config (standard DiffWave sizes)
    LCO = {"diffusion_vocoder": {"step_embed_dim_in": 128,
                                 "step_embed_dim_hidden": 512,
                                 "step_embed_dim_out": 512}}
    dim_in = LCO["diffusion_vocoder"]["step_embed_dim_in"]
    hidden = LCO["diffusion_vocoder"]["step_embed_dim_hidden"]
    dim_out = LCO["diffusion_vocoder"]["step_embed_dim_out"]
    B = 16

    key = jax.random.PRNGKey(0)
    k_s, k_p = jax.random.split(key)
    # diffusion timesteps, shaped (B, 1) as in the PyTorch module
    steps = jax.random.randint(k_s, (B, 1), 0, 200).astype(jnp.float32)
    params = make_params(k_p, dim_in, hidden, dim_out)

    out = step_embedding_pallas(steps, params, dim_in=dim_in, batch_tile=8)
    out = jax.block_until_ready(out)

    ref = step_embedding_reference(steps, params, dim_in=dim_in)
    assert out.shape == (B, dim_out)
    assert jnp.allclose(out, ref, atol=1e-4, rtol=1e-4), "step embedding mismatch"

    print("KERNEL_OK")
</pallas_src>

<mosaic_0001>
module attributes {stable_mosaic.version = 11 : i64} {
  func.func @step_embedding_kernel(%arg0: i32, %arg1: memref<8x1xf32, #tpu.memory_space<vmem>>, %arg2: memref<1x64xf32, #tpu.memory_space<vmem>>, %arg3: memref<128x512xf32, #tpu.memory_space<vmem>>, %arg4: memref<1x512xf32, #tpu.memory_space<vmem>>, %arg5: memref<512x512xf32, #tpu.memory_space<vmem>>, %arg6: memref<1x512xf32, #tpu.memory_space<vmem>>, %arg7: memref<8x512xf32, #tpu.memory_space<vmem>>) attributes {dimension_semantics = [#tpu.dimension_semantics<parallel>], iteration_bounds = array<i64: 2>, scalar_prefetch = 0 : i64, scratch_operands = 0 : i64, tpu.core_type = #tpu.core_type<tc>, window_params = [{transform_indices = @transform_0, window_bounds = array<i64: 8, 1>}, {pipeline_mode = #tpu.pipeline_mode<synchronous>, transform_indices = @transform_1, window_bounds = array<i64: 1, 64>}, {pipeline_mode = #tpu.pipeline_mode<synchronous>, transform_indices = @transform_2, window_bounds = array<i64: 128, 512>}, {pipeline_mode = #tpu.pipeline_mode<synchronous>, transform_indices = @transform_3, window_bounds = array<i64: 1, 512>}, {pipeline_mode = #tpu.pipeline_mode<synchronous>, transform_indices = @transform_4, window_bounds = array<i64: 512, 512>}, {pipeline_mode = #tpu.pipeline_mode<synchronous>, transform_indices = @transform_5, window_bounds = array<i64: 1, 512>}, {transform_indices = @transform_6, window_bounds = array<i64: 8, 512>}]} {
    %c0 = arith.constant 0 : index
    %c0_0 = arith.constant 0 : index
    %0 = vector.load %arg1[%c0, %c0_0] : memref<8x1xf32, #tpu.memory_space<vmem>>, vector<8x1xf32>
    %c0_1 = arith.constant 0 : index
    %c0_2 = arith.constant 0 : index
    %1 = vector.load %arg2[%c0_1, %c0_2] : memref<1x64xf32, #tpu.memory_space<vmem>>, vector<1x64xf32>
    %2 = vector.broadcast %0 : vector<8x1xf32> to vector<8x64xf32>
    %3 = vector.broadcast %1 : vector<1x64xf32> to vector<8x64xf32>
    %4 = arith.mulf %2, %3 : vector<8x64xf32>
    %5 = math.sin %4 : vector<8x64xf32>
    %6 = math.cos %4 : vector<8x64xf32>
    %7 = tpu.concatenate %5, %6 in 1 : vector<8x64xf32>, vector<8x64xf32> -> vector<8x128xf32>
    %c0_3 = arith.constant 0 : index
    %c0_4 = arith.constant 0 : index
    %8 = vector.load %arg3[%c0_3, %c0_4] : memref<128x512xf32, #tpu.memory_space<vmem>>, vector<128x512xf32>
    %cst = arith.constant dense<0.000000e+00> : vector<8x512xf32>
    %9 = tpu.matmul %7, %8, %cst {dimension_numbers = #tpu.dot_dimension_numbers<[1], [0], [0], [1], [0, 0, 1, 1], [], []>} : vector<8x128xf32>, vector<128x512xf32>, vector<8x512xf32> -> vector<8x512xf32>
    %c0_5 = arith.constant 0 : index
    %c0_6 = arith.constant 0 : index
    %10 = vector.load %arg4[%c0_5, %c0_6] : memref<1x512xf32, #tpu.memory_space<vmem>>, vector<1x512xf32>
    %11 = vector.broadcast %10 : vector<1x512xf32> to vector<8x512xf32>
    %12 = arith.addf %9, %11 : vector<8x512xf32>
    %13 = arith.negf %12 : vector<8x512xf32>
    %14 = math.exp %13 : vector<8x512xf32>
    %cst_7 = arith.constant 1.000000e+00 : f32
    %15 = vector.broadcast %cst_7 : f32 to vector<8x512xf32>
    %16 = arith.addf %15, %14 : vector<8x512xf32>
    %17 = arith.divf %15, %16 : vector<8x512xf32>
    %18 = arith.mulf %12, %17 : vector<8x512xf32>
    %c0_8 = arith.constant 0 : index
    %c0_9 = arith.constant 0 : index
    %19 = vector.load %arg5[%c0_8, %c0_9] : memref<512x512xf32, #tpu.memory_space<vmem>>, vector<512x512xf32>
    %cst_10 = arith.constant dense<0.000000e+00> : vector<8x512xf32>
    %20 = tpu.matmul %18, %19, %cst_10 {dimension_numbers = #tpu.dot_dimension_numbers<[1], [0], [0], [1], [0, 0, 1, 1], [], []>} : vector<8x512xf32>, vector<512x512xf32>, vector<8x512xf32> -> vector<8x512xf32>
    %c0_11 = arith.constant 0 : index
    %c0_12 = arith.constant 0 : index
    %21 = vector.load %arg6[%c0_11, %c0_12] : memref<1x512xf32, #tpu.memory_space<vmem>>, vector<1x512xf32>
    %22 = vector.broadcast %21 : vector<1x512xf32> to vector<8x512xf32>
    %23 = arith.addf %20, %22 : vector<8x512xf32>
    %24 = arith.negf %23 : vector<8x512xf32>
    %25 = math.exp %24 : vector<8x512xf32>
    %cst_13 = arith.constant 1.000000e+00 : f32
    %26 = vector.broadcast %cst_13 : f32 to vector<8x512xf32>
    %27 = arith.addf %26, %25 : vector<8x512xf32>
    %28 = arith.divf %26, %27 : vector<8x512xf32>
    %29 = arith.mulf %23, %28 : vector<8x512xf32>
    %c0_14 = arith.constant 0 : index
    %c0_15 = arith.constant 0 : index
    %30 = vector.load %arg7[%c0_14, %c0_15] : memref<8x512xf32, #tpu.memory_space<vmem>>, vector<8x512xf32>
    tpu.vector_store %arg7[%c0_14, %c0_15], %29 {strides = array<i32>} : memref<8x512xf32, #tpu.memory_space<vmem>>, vector<8x512xf32>,
    return
  }
  func.func @transform_0(%arg0: i32) -> (i32, i32) {
    %c0_i32 = arith.constant 0 : i32
    %c0_i32_0 = arith.constant 0 : i32
    return %arg0, %c0_i32 : i32, i32
  }
  func.func @transform_1(%arg0: i32) -> (i32, i32) {
    %c0_i32 = arith.constant 0 : i32
    %c0_i32_0 = arith.constant 0 : i32
    %c0_i32_1 = arith.constant 0 : i32
    return %c0_i32, %c0_i32_0 : i32, i32
  }
  func.func @transform_2(%arg0: i32) -> (i32, i32) {
    %c0_i32 = arith.constant 0 : i32
    %c0_i32_0 = arith.constant 0 : i32
    %c0_i32_1 = arith.constant 0 : i32
    return %c0_i32, %c0_i32_0 : i32, i32
  }
  func.func @transform_3(%arg0: i32) -> (i32, i32) {
    %c0_i32 = arith.constant 0 : i32
    %c0_i32_0 = arith.constant 0 : i32
    %c0_i32_1 = arith.constant 0 : i32
    return %c0_i32, %c0_i32_0 : i32, i32
  }
  func.func @transform_4(%arg0: i32) -> (i32, i32) {
    %c0_i32 = arith.constant 0 : i32
    %c0_i32_0 = arith.constant 0 : i32
    %c0_i32_1 = arith.constant 0 : i32
    return %c0_i32, %c0_i32_0 : i32, i32
  }
  func.func @transform_5(%arg0: i32) -> (i32, i32) {
    %c0_i32 = arith.constant 0 : i32
    %c0_i32_0 = arith.constant 0 : i32
    %c0_i32_1 = arith.constant 0 : i32
    return %c0_i32, %c0_i32_0 : i32, i32
  }
  func.func @transform_6(%arg0: i32) -> (i32, i32) {
    %c0_i32 = arith.constant 0 : i32
    %c0_i32_0 = arith.constant 0 : i32
    return %arg0, %c0_i32 : i32, i32
  }
}

</mosaic_0001>

<bundles_post_ra>
// kernel: tpu_custom_call.1
= control target key start
LH: loop header
LB: loop body
LE: loop exit
PB: predicated region body
PF: predicated region fallthrough
CT: control target
= control target key end

     0   :  { %11 = vsyncpa [#allocation3], 0  ;;  %s2195_s0 = inlined_call_operand.vmem [shape: f32[16,1], index: 0, kind: input, shape index: {}]   ;;  %s2196_s1 = inlined_call_operand.vmem [shape: f32[1,64], index: 1, kind: input, shape index: {}]   ;;  %s2197_s2 = inlined_call_operand.hbm [shape: f32[128,512], index: 2, kind: input, shape index: {}]   ;;  %s2198_s3 = inlined_call_operand.vmem [shape: f32[1,512], index: 3, kind: input, shape index: {}]   ;;  %s2199_s4 = inlined_call_operand.hbm [shape: f32[512,512], index: 4, kind: input, shape index: {}]   ;;  %s2200_s5 = inlined_call_operand.vmem [shape: f32[1,512], index: 5, kind: input, shape index: {}]   ;;  %s2201_s6 = inlined_call_operand.hbm [shape: f32[16,512], index: 6, kind: output, shape index: {}]  }
   0x1   :  { %12 = vsyncpa [#allocation6], 0 }
   0x2   :  { %13 = vsyncpa [#allocation4], 0 }
   0x3   :  { %15 = vsyncpa [#allocation4 + $0x1], 0  ;;  %s1922_s21 = smov 0   ;;  %s1924_s22 = smov 0  }
   0x4   :  { %s1926_s23 = smov 0   ;;  %s1928_s24 = smov 0  }
   0x5 LB: > { %s1943_s25 = sadd.s32 4294967295, %s1873_s24   ;;  %s1609_s26 = sadd.s32 4294967294, %s1873_s24   ;;  %s1873_s24 = sphi %s1928_s24, %s2210_s24   ;;  %s1869_s23 = sphi %s1926_s23, %s2209_s23   ;;  %s1865_s22 = sphi %s1924_s22, %s2208_s22   ;;  %s1861_s21 = sphi %s1922_s21, %s2207_s21  }
   0x6   : > { %s1947_s27 = sadd.s32 1, %s1873_s24   ;;  %s159_s28 = sadd.s32 1, %s1869_s23 }
   0x7   : > { %s156_s29 = ssub.s32 %s1873_s24, %s1947_s27  ;;  %p169_p0 = scmp.ne.s32.totalorder %s1869_s23, %s1865_s22 }
   0x8   : > { %p157_p1 = scmp.eq.s32.totalorder %s156_s29, 0  ;;  %p170_p2 = scmp.eq.s32.totalorder %s1943_s25, 1 }
   0x9   : > { %p175_p3 = scmp.ne.s32.totalorder %s1865_s22, %s1861_s21  ;;  %p176_p4 = scmp.eq.s32.totalorder %s1609_s26, 1 }
   0xa   : > { %s1958_s30 = scalar_select %p157_p1, %s1869_s23, %s159_s28  }
   0xb   : > { %p1960_p5 = por %p170_p2, %p169_p0  ;;  %p1964_p6 = por %p176_p4, %p175_p3 }
   0xc   : > { %p1610_p7 = scmp.ge.s32.totalorder %s1873_s24, 1  ;;  %p183_p8 = scmp.lt.s32.totalorder %s1873_s24, 3 }
   0xd   : > { %p1660_p9 = scmp.eq.s32.totalorder %s1943_s25, 0  ;;  %s197_s12 = sshll.u32 %s2197_s2, 4  ;;  %s198_s12 = int_to_ptr.hbm [resolvable:$true] %s197_s12 }
   0xe   : > { %p1971_p10 = pnand %p1610_p7, %p183_p8  ;;  %s1875_s13 = smov [#allocation2]  }
   0xf   : > { %s199_s14 = sshll.u32 %s1875_s13, 4  ;;  %s214_s17 = sshll.u32 %s2199_s4, 4  ;;  %s200_s14 = int_to_ptr.vmem [resolvable:$true] %s199_s14  ;;  %s215_s17 = int_to_ptr.hbm [resolvable:$true] %s214_s17 }
  0x10   : > { %p1649_p11 = pneg %p1971_p10  ;;  %s1876_s18 = smov 512  }
  0x11   : > { %s1877_s19 = smov 32   ;;  %s1878_s20 = smov [#allocation5]  }
  0x12   : > { %p1650_p12 = pnand %p1660_p9, %p1649_p11  ;;  %s216_s26 = sshll.u32 %s1878_s20, 4  ;;  %s217_s26 = int_to_ptr.vmem [resolvable:$true] %s216_s26 }
  0x13   : > { %242 = sbr.rel (%p1971_p10) target bundleno = 766 (0x2fe), region = 44 }
  0x14   : > { %1652 = dma.hbm_to_vmem [thread:$0]  (!%p1650_p12), %s198_s12, 8192, %s200_s14, [#allocation3], %s1876_s18, %s1876_s18, %s1877_s19  }
  0x15   : > { %1655 = dma.hbm_to_vmem [thread:$0]  (!%p1650_p12), %s215_s17, 32768, %s217_s26, [#allocation6], %s1876_s18, %s1876_s18, %s1877_s19  }
  0x18   : > { %1848 = dma.done.wait (%p1660_p9), [#allocation3], 8192  }
  0x19   : > { %1850 = vsyncadd (%p1660_p9), [#allocation3], 4294959104 }
  0x1a   : > { %1852 = dma.done.wait (%p1660_p9), [#allocation6], 32768  }
  0x1b   : > { %1854 = vsyncadd (%p1660_p9), [#allocation6], 4294934528  ;;  %p277_p13 = scmp.lt.s32.totalorder %s1943_s25, 1  ;;  %v1879_v0 = vmov 0   ;;  %v1710_v2 = vld [vmem:[%s2196_s1] ss:$0 sm:$0xff] }
  0x1c   : > { %1709 = vset.pattern.permute.xlu0 %v1879_v0  ;;  %v1880_v16 = vmov 683565275   ;;  %v1881_v18 = vmov 2475754826   ;;  %v1882_v20 = vmov 2131351028  }
  0x1d   : > { %s278_s28 = scalar_select %p277_p13, %s1943_s25, 1  ;;  %v1883_v22 = vmov 2102212464   ;;  %v1884_v27 = vmov 920167782  }
  0x1e   : > { %v1885_v30 = vmov 1326507024   ;;  %s1886_s14 = smov 64   ;;  %s274_s19 = sand.u32 1, %s1865_s22  }
  0x1f   : > { %s1618_s29 = sshll.u32 %s278_s28, 3  ;;  %s1617_s20 = sshll.u32 %s274_s19, 5 }
  0x20   : > { %s280_s11 = scalar_lea.vmem %s2195_s0, %s1618_s29  ;;  %s2154_s26 = scalar_lea.vmem [#allocation7], %s1617_s20 }
  0x21   : > { %v281_v1 = vld [vmem:[%s280_s11] sm:$0xff]  ;;  %s1638_s28 = sshll.u32 %s1943_s25, 5  ;;  %s1525_s11 = sshll.u32 %s2154_s26, 4  ;;  %s1526_s11 = int_to_ptr.vmem [resolvable:$true] %s1525_s11 }
  0x22   : > { %285 = vperm.xlu0 %1709, %v281_v1   ;;  %s1523_s10 = scalar_lea.hbm %s2201_s6, %s1638_s28  ;;  %s1512_s25 = scalar_lea.sflag [#allocation4], %s274_s19 }
  0x23   : > { %s1527_s12 = sshll.u32 %s1523_s10, 4  ;;  %s1823_s17 = scalar_lea.hbm %s2201_s6, 64  ;;  %s1528_s12 = int_to_ptr.hbm [resolvable:$true] %s1527_s12 }
  0x24   : > { %s1817_s13 = sshra.s32 %s1528_s12, 4  ;;  %s1818_s13 = int_to_ptr.hbm [resolvable:$true] %s1817_s13 }
  0x25   : > { %p1824_p3 = scmp.lt.s32.totalorder %s1818_s13, %s2201_s6 }
  0x94   : > { %v286_v3 = vpop.permute.xlu0 %285 }
  0x95   : > { %v2004_v4 = vmul.f32 %v1710_v2, %v286_v3 }
  0x97   : > { %v295_v5 = vand.u32 2139095040, %v2004_v4  ;;  %v292_v7 = vand.u32 2147483647, %v2004_v4  ;;  %vm294_vm12 = vcmp.lt.s32.totalorder %v2004_v4, 0 }
  0x99   : > { %v296_v6 = vshrl.u32 %v295_v5, 23  ;;  %v299_v10 = vand.u32 8388607, %v292_v7  ;;  %vm2056_vm13 = vcmp.le.f32.partialorder %v292_v7, 0.7853982 }
  0x9b   : > { %v1619_v8 = vadd.s32 4294967169, %v296_v6  ;;  %v300_v13 = vor.u32 8388608, %v299_v10 }
  0x9d   : > { %v302_v9 = vadd.s32 1, %v1619_v8  ;;  %v2012_v32 = vshll.u32 %v300_v13, 8 }
  0x9f   : > { %vm303_vm0 = vcmp.gt.s32.totalorder %v302_v9, 0  ;;  %v341_v44 = vand.u32 65535, %v2012_v32  ;;  %v342_v46 = vshrl.u32 %v2012_v32, 16 }
  0xa0   : > { %v304_v11 = vsel %vm303_vm0, %v302_v9, 0 }
  0xa1   : > { %v306_v12 = vand.u32 31, %v304_v11  ;;  %v2010_v14 = vshrl.u32 %v304_v11, 5 }
  0xa3   : > { %v307_v15 = vsub.s32 32, %v306_v12  ;;  %v309_v17 = vshll.u32 %v1880_v16, %v306_v12  ;;  %v312_v19 = vshll.u32 %v1881_v18, %v306_v12  ;;  %v315_v21 = vshll.u32 %v1882_v20, %v306_v12 }
  0xa4   : > { %v318_v23 = vshll.u32 %v1883_v22, %v306_v12  ;;  %v321_v29 = vshll.u32 %v1884_v27, %v306_v12  ;;  %vm324_vm1 = vcmp.lt.s32.totalorder %v2010_v14, 1  ;;  %vm327_vm2 = vcmp.lt.s32.totalorder %v2010_v14, 4 }
  0xa5   : > { %v310_v24 = vshrl.u32 %v1881_v18, %v307_v15  ;;  %v313_v25 = vshrl.u32 %v1882_v20, %v307_v15  ;;  %v316_v26 = vshrl.u32 %v1883_v22, %v307_v15  ;;  %v319_v28 = vshrl.u32 %v1884_v27, %v307_v15 }
  0xa6   : > { %v322_v31 = vshrl.u32 %v1885_v30, %v307_v15  ;;  %vm326_vm3 = vcmp.lt.s32.totalorder %v2010_v14, 3  ;;  %vm325_vm4 = vcmp.lt.s32.totalorder %v2010_v14, 2  ;;  %v308_v9 = vshrl.u32 %v1880_v16, %v307_v15 }
  0xa7   : > { %v311_v33 = vor.u32 %v310_v24, %v309_v17  ;;  %v314_v34 = vor.u32 %v313_v25, %v312_v19  ;;  %v317_v35 = vor.u32 %v316_v26, %v315_v21  ;;  %v320_v36 = vor.u32 %v319_v28, %v318_v23 }
  0xa8   : > { %v323_v37 = vor.u32 %v322_v31, %v321_v29 }
  0xa9   : > { %v332_v38 = vsel %vm324_vm1, %v311_v33, %v314_v34  ;;  %v333_v39 = vsel %vm327_vm2, %v320_v36, 920167782  ;;  %v336_v40 = vsel %vm324_vm1, %v314_v34, %v317_v35  ;;  %v329_v5 = vsel %vm327_vm2, %v317_v35, 2102212464 }
  0xaa   : > { %v334_v41 = vsel %vm326_vm3, %v317_v35, %v333_v39  ;;  %v337_v42 = vsel %vm327_vm2, %v323_v37, 1326507024  ;;  %v328_v18 = vsel %vm324_vm1, %v308_v9, %v311_v33  ;;  %v330_v19 = vsel %vm326_vm3, %v314_v34, %v329_v5  ;;  %v651_v5 = vld [vmem:[#allocation2 + $0x160] sm:$0xff] }
  0xab   : > { %v338_v43 = vsel %vm326_vm3, %v320_v36, %v337_v42  ;;  %v335_v45 = vsel %vm325_vm4, %v332_v38, %v334_v41  ;;  %v331_v16 = vsel %vm325_vm4, %v328_v18, %v330_v19  ;;  %v649_v19 = vld [vmem:[#allocation2 + $0x150] sm:$0xff] }
  0xac   : > { %v339_v47 = vsel %vm325_vm4, %v336_v40, %v338_v43  ;;  %v365_v48 = vand.u32 65535, %v335_v45  ;;  %v366_v49 = vshrl.u32 %v335_v45, 16  ;;  %v385_v28 = vmul.u32 %v2012_v32, %v331_v16  ;;  %v646_v16 = vld [vmem:[#allocation2 + $0x138] sm:$0xff] }
  0xad   : > { %v343_v50 = vand.u32 65535, %v339_v47  ;;  %v344_v51 = vshrl.u32 %v339_v47, 16  ;;  %v667_v47 = vld [vmem:[#allocation2 + $0x1e0] sm:$0xff]  ;;  %vm435_vm4 = vweird.f32 %v2004_v4 }
  0xae   : > { %v368_v52 = vmul.u32 %v366_v49, %v341_v44  ;;  %v369_v53 = vmul.u32 %v365_v48, %v342_v46  ;;  %v367_v56 = vmul.u32 %v365_v48, %v341_v44  ;;  %v370_v60 = vmul.u32 %v366_v49, %v342_v46  ;;  %v668_v48 = vld [vmem:[#allocation2 + $0x1e8] sm:$0xff]  ;;  %v669_v49 = vld [vmem:[#allocation2 + $0x1f0] sm:$0xff]  ;;  %681 = vmatpush.msra.mxu0 %v667_v47 }
  0xaf   : > { %v346_v54 = vmul.u32 %v344_v51, %v341_v44  ;;  %v347_v55 = vmul.u32 %v343_v50, %v342_v46  ;;  %v345_v58 = vmul.u32 %v343_v50, %v341_v44  ;;  %v348_v61 = vmul.u32 %v344_v51, %v342_v46  ;;  %701 = vmatpush.msra.mxu1 %v668_v48  ;;  %v670_v51 = vld [vmem:[#allocation2 + $0x1f8] sm:$0xff]  ;;  %v629_v47 = vld [vmem:[#allocation2 + $0xb0] sm:$0xff] }
  0xb0   : > { %v371_v57 = vshll.u32 %v368_v52, 16  ;;  %v373_v62 = vshll.u32 %v369_v53, 16  ;;  %v372_v13 = vshrl.u32 %v368_v52, 16  ;;  %v374_v22 = vshrl.u32 %v369_v53, 16  ;;  %v663_v52 = vld [vmem:[#allocation2 + $0x1c0] sm:$0xff]  ;;  %v664_v53 = vld [vmem:[#allocation2 + $0x1c8] sm:$0xff]  ;;  %721 = vmatpush.msra.mxu2 %v669_v49  ;;  %741 = vmatpush.msra.mxu3 %v670_v51 }
  0xb1   : > { %v349_v59 = vshll.u32 %v346_v54, 16  ;;  %v351_v1 = vshll.u32 %v347_v55, 16  ;;  %v350_v20 = vshrl.u32 %v346_v54, 16  ;;  %v352_v24 = vshrl.u32 %v347_v55, 16  ;;  %v665_v54 = vld [vmem:[#allocation2 + $0x1d0] sm:$0xff]  ;;  %v666_v55 = vld [vmem:[#allocation2 + $0x1d8] sm:$0xff]  ;;  %682 = vmatpush.msra.mxu0 %v663_v52  ;;  %702 = vmatpush.msra.mxu1 %v664_v53 }
  0xb2   : > { %vm375_vm5 = vc.u32 %v367_v56, %v371_v57  ;;  %v377_v63 = vadd.s32 %v371_v57, %v367_v56  ;;  %v659_v56 = vld [vmem:[#allocation2 + $0x1a0] sm:$0xff]  ;;  %722 = vmatpush.msra.mxu2 %v665_v54  ;;  %742 = vmatpush.msra.mxu3 %v666_v55  ;;  %v630_v48 = vld [vmem:[#allocation2 + $0xb8] sm:$0xff]  ;;  %v625_v53 = vld [vmem:[#allocation2 + $0x90] sm:$0xff] }
  0xb3   : > { %vm353_vm6 = vc.u32 %v345_v58, %v349_v59  ;;  %v355_v2 = vadd.s32 %v349_v59, %v345_v58  ;;  %v376_v3 = vsel %vm375_vm5, 1, %v1879_v0  ;;  %v660_v59 = vld [vmem:[#allocation2 + $0x1a8] sm:$0xff]  ;;  %683 = vmatpush.msra.mxu0 %v659_v56  ;;  %v623_v49 = vld [vmem:[#allocation2 + $0x80] sm:$0xff]  ;;  %v626_v54 = vld [vmem:[#allocation2 + $0x98] sm:$0xff]  ;;  %vm605_vm5 = vcmask 523264  }
  0xb4   : > { %v354_v6 = vsel %vm353_vm6, 1, %v1879_v0  ;;  %v378_v8 = vadd.s32 %v376_v3, %v370_v60  ;;  %vm379_vm7 = vc.u32 %v377_v63, %v373_v62  ;;  %v661_v60 = vld [vmem:[#allocation2 + $0x1b0] sm:$0xff]  ;;  %703 = vmatpush.msra.mxu1 %v660_v59  ;;  %v658_v3 = vld [vmem:[#allocation2 + $0x198] sm:$0xff]  ;;  %v619_v56 = vld [vmem:[#allocation2 + $0x60] sm:$0xff] }
  0xb5   : > { %v356_v10 = vadd.s32 %v354_v6, %v348_v61  ;;  %vm357_vm8 = vc.u32 %v355_v2, %v351_v1  ;;  %v380_v11 = vsel %vm379_vm7, 1, %v1879_v0  ;;  %v662_v61 = vld [vmem:[#allocation2 + $0x1b8] sm:$0xff]  ;;  %v657_v2 = vld [vmem:[#allocation2 + $0x190] sm:$0xff]  ;;  %723 = vmatpush.msra.mxu2 %v661_v60  ;;  %v652_v6 = vld [vmem:[#allocation2 + $0x168] sm:$0xff] }
  0xb6   : > { %v358_v12 = vsel %vm357_vm8, 1, %v1879_v0  ;;  %v382_v17 = vadd.s32 %v380_v11, %v378_v8  ;;  %v381_v0 = vadd.s32 %v377_v63, %v373_v62  ;;  %v655_v62 = vld [vmem:[#allocation2 + $0x180] sm:$0xff]  ;;  %v656_v63 = vld [vmem:[#allocation2 + $0x188] sm:$0xff]  ;;  %743 = vmatpush.msra.mxu3 %v662_v61  ;;  %v654_v11 = vld [vmem:[#allocation2 + $0x178] sm:$0xff] }
  0xb7   : > { %v360_v21 = vadd.s32 %v358_v12, %v356_v10  ;;  %684 = vmatpush.msra.mxu0 %v655_v62  ;;  %704 = vmatpush.msra.mxu1 %v656_v63  ;;  %v653_v10 = vld [vmem:[#allocation2 + $0x170] sm:$0xff]  ;;  %v647_v12 = vld [vmem:[#allocation2 + $0x140] sm:$0xff]  ;;  %v622_v61 = vld [vmem:[#allocation2 + $0x78] sm:$0xff] }
  0xb8   : > { %v383_v23 = vadd.s32 %v382_v17, %v372_v13  ;;  %724 = vmatpush.msra.mxu2 %v657_v2  ;;  %744 = vmatpush.msra.mxu3 %v658_v3  ;;  %v648_v13 = vld [vmem:[#allocation2 + $0x148] sm:$0xff]  ;;  %v621_v60 = vld [vmem:[#allocation2 + $0x70] sm:$0xff]  ;;  %v615_v63 = vld [vmem:[#allocation2 + $0x40] sm:$0xff] }
  0xb9   : > { %v361_v15 = vadd.s32 %v360_v21, %v350_v20  ;;  %685 = vmatpush.msra.mxu0 %v651_v5  ;;  %705 = vmatpush.msra.mxu1 %v652_v6  ;;  %v650_v20 = vld [vmem:[#allocation2 + $0x158] sm:$0xff]  ;;  %v617_v5 = vld [vmem:[#allocation2 + $0x50] sm:$0xff] }
  0xba   : > { %v384_v25 = vadd.s32 %v383_v23, %v374_v22  ;;  %725 = vmatpush.msra.mxu2 %v653_v10  ;;  %745 = vmatpush.msra.mxu3 %v654_v11  ;;  %v643_v22 = vld [vmem:[#allocation2 + $0x120] sm:$0xff]  ;;  %v644_v23 = vld [vmem:[#allocation2 + $0x128] sm:$0xff]  ;;  %v618_v6 = vld [vmem:[#allocation2 + $0x58] sm:$0xff] }
  0xbb   : > { %v362_v26 = vadd.s32 %v361_v15, %v352_v24  ;;  %686 = vmatpush.msra.mxu0 %v647_v12  ;;  %706 = vmatpush.msra.mxu1 %v648_v13  ;;  %v645_v15 = vld [vmem:[#allocation2 + $0x130] sm:$0xff]  ;;  %v614_v13 = vld [vmem:[#allocation2 + $0x38] sm:$0xff] }
  0xbc   : > { %v388_v27 = vadd.s32 1, %v384_v25  ;;  %726 = vmatpush.msra.mxu2 %v649_v19  ;;  %746 = vmatpush.msra.mxu3 %v650_v20  ;;  %v613_v12 = vld [vmem:[#allocation2 + $0x30] sm:$0xff] }
  0xbd   : > { %vm387_vm9 = vc.u32 %v362_v26, %v381_v0  ;;  %v386_v40 = vadd.s32 %v381_v0, %v362_v26  ;;  %v640_v26 = vld [vmem:[#allocation2 + $0x108] sm:$0xff]  ;;  %687 = vmatpush.msra.mxu0 %v643_v22  ;;  %707 = vmatpush.msra.mxu1 %v644_v23 }
  0xbe   : > { %v389_v29 = vsel %vm387_vm9, %v388_v27, %v384_v25  ;;  %v639_v25 = vld [vmem:[#allocation2 + $0x100] sm:$0xff]  ;;  %727 = vmatpush.msra.mxu2 %v645_v15  ;;  %747 = vmatpush.msra.mxu3 %v646_v16  ;;  %v609_v15 = vld [vmem:[#allocation2 + $0x10] sm:$0xff]  ;;  %v610_v16 = vld [vmem:[#allocation2 + $0x18] sm:$0xff] }
  0xbf   : > { %v390_v30 = vadd.s32 %v389_v29, %v385_v28  ;;  %v641_v28 = vld [vmem:[#allocation2 + $0x110] sm:$0xff]  ;;  %v642_v29 = vld [vmem:[#allocation2 + $0x118] sm:$0xff]  ;;  %688 = vmatpush.msra.mxu0 %v639_v25  ;;  %708 = vmatpush.msra.mxu1 %v640_v26  ;;  %v901_v25 = vld [vmem:[#allocation5 + $0x1e0] sm:$0xff] }
  0xc0   : > { %728 = vmatpush.msra.mxu2 %v641_v28  ;;  %748 = vmatpush.msra.mxu3 %v642_v29  ;;  %v965_v26 = vld [vmem:[#allocation5 + $0x3e0] sm:$0xff] }
  0xc1   : > { %v391_v31 = vadd.s32 536870912, %v390_v30  ;;  %v957_v28 = vld [vmem:[#allocation5 + $0x3a0] sm:$0xff] }
  0xc2   : > { %v1029_v29 = vld [vmem:[#allocation5 + $0x5e0] sm:$0xff] }
  0xc3   : > { %v2049_v33 = vshrl.u32 %v391_v31, 30  ;;  %v635_v31 = vld [vmem:[#allocation2 + $0xe0] sm:$0xff] }
  0xc4   : > { %689 = vmatpush.msra.mxu0 %v635_v31  ;;  %v1093_v31 = vld [vmem:[#allocation5 + $0x7e0] sm:$0xff] }
  0xc5   : > { %v393_v34 = vshll.u32 %v2049_v33, 30  ;;  %v416_v9 = vsub.s32 4, %v2049_v33 }
  0xc7   : > { %v394_v35 = vsub.s32 %v390_v30, %v393_v34  ;;  %v417_v7 = vsel %vm294_vm12, %v416_v9, %v2049_v33  ;;  %v636_v33 = vld [vmem:[#allocation2 + $0xe8] sm:$0xff] }
  0xc8   : > { %v419_v30 = vsel %vm2056_vm13, 0, %v417_v7  ;;  %709 = vmatpush.msra.mxu1 %v636_v33  ;;  %v612_v9 = vld [vmem:[#allocation2 + $0x28] sm:$0xff]  ;;  %v607_v7 = vld [vmem:[#allocation2] sm:$0xff] }
  0xc9   : > { %vm395_vm10 = vcmp.lt.s32.totalorder %v394_v35, 0  ;;  %v396_v36 = vsub.s32 0, %v394_v35  ;;  %v591_v62 = vand.u32 3, %v419_v30  ;;  %v953_v33 = vld [vmem:[#allocation5 + $0x380] sm:$0xff] }
  0xcb   : > { %v397_v37 = vsel %vm395_vm10, %v396_v36, %v394_v35  ;;  %v637_v36 = vld [vmem:[#allocation2 + $0xf0] sm:$0xff]  ;;  %vm592_vm0 = vcmp.lt.s32.totalorder %v591_v62, 2  ;;  %vm593_vm1 = vcmp.eq.s32.totalorder %v591_v62, 0  ;;  %vm596_vm2 = vcmp.eq.s32.totalorder %v591_v62, 2  ;;  %v993_v62 = vld [vmem:[#allocation5 + $0x4c0] sm:$0xff] }
  0xcc   : > { %v398_v14 = vclz %v397_v37  ;;  %v638_v37 = vld [vmem:[#allocation2 + $0xf8] sm:$0xff]  ;;  %729 = vmatpush.msra.mxu2 %v637_v36  ;;  %v1021_v36 = vld [vmem:[#allocation5 + $0x5a0] sm:$0xff] }
  0xcd   : > { %749 = vmatpush.msra.mxu3 %v638_v37  ;;  %v1085_v37 = vld [vmem:[#allocation5 + $0x7a0] sm:$0xff] }
  0xce   : > { %v1620_v38 = vadd.s32 4294967294, %v398_v14  ;;  %v631_v14 = vld [vmem:[#allocation2 + $0xc0] sm:$0xff] }
  0xcf   : > { %690 = vmatpush.msra.mxu0 %v631_v14  ;;  %v885_v14 = vld [vmem:[#allocation5 + $0x160] sm:$0xff] }
  0xd0   : > { %vm1621_vm11 = vcmp.lt.s32.totalorder %v1620_v38, 0 }
  0xd1   : > { %v401_v39 = vsel %vm1621_vm11, 0, %v1620_v38  ;;  %v632_v38 = vld [vmem:[#allocation2 + $0xc8] sm:$0xff] }
  0xd2   : > { %v402_v41 = vsub.s32 32, %v401_v39  ;;  %v406_v42 = vsub.s32 4294967266, %v401_v39  ;;  %v403_v32 = vshll.u32 %v394_v35, %v401_v39  ;;  %710 = vmatpush.msra.mxu1 %v632_v38  ;;  %v949_v38 = vld [vmem:[#allocation5 + $0x360] sm:$0xff] }
  0xd4   : > { %v404_v43 = vshrl.u32 %v386_v40, %v402_v41  ;;  %v407_v44 = vadd.s32 127, %v406_v42  ;;  %v633_v41 = vld [vmem:[#allocation2 + $0xd0] sm:$0xff]  ;;  %v634_v42 = vld [vmem:[#allocation2 + $0xd8] sm:$0xff] }
  0xd5   : > { %730 = vmatpush.msra.mxu2 %v633_v41  ;;  %750 = vmatpush.msra.mxu3 %v634_v42  ;;  %v881_v41 = vld [vmem:[#allocation5 + $0x140] sm:$0xff] }
  0xd6   : > { %v405_v45 = vor.u32 %v404_v43, %v403_v32  ;;  %v408_v46 = vshll.u32 %v407_v44, 23  ;;  %v436_v32 = vadd.s32 3, %v419_v30  ;;  %v627_v43 = vld [vmem:[#allocation2 + $0xa0] sm:$0xff]  ;;  %v628_v44 = vld [vmem:[#allocation2 + $0xa8] sm:$0xff] }
  0xd7   : > { %691 = vmatpush.msra.mxu0 %v627_v43  ;;  %711 = vmatpush.msra.mxu1 %v628_v44  ;;  %v889_v30 = vld [vmem:[#allocation5 + $0x180] sm:$0xff] }
  0xd8   : > { %v409_v50 = vor.u32 4788187, %v408_v46  ;;  %v412_v58 = vcvt.s32.f32 %v405_v45  ;;  %v437_v55 = vand.u32 3, %v436_v32  ;;  %731 = vmatpush.msra.mxu2 %v629_v47  ;;  %751 = vmatpush.msra.mxu3 %v630_v48  ;;  %v945_v42 = vld [vmem:[#allocation5 + $0x340] sm:$0xff] }
  0xd9   : > { %692 = vmatpush.msra.mxu0 %v623_v49  ;;  %v1013_v32 = vld [vmem:[#allocation5 + $0x560] sm:$0xff] }
  0xda   : > { %v410_v57 = vand.u32 2147483647, %v409_v50  ;;  %v624_v50 = vld [vmem:[#allocation2 + $0x88] sm:$0xff]  ;;  %732 = vmatpush.msra.mxu2 %v625_v53  ;;  %752 = vmatpush.msra.mxu3 %v626_v54  ;;  %vm442_vm14 = vcmp.eq.s32.totalorder %v437_v55, 2  ;;  %vm439_vm15 = vcmp.eq.s32.totalorder %v437_v55, 0  ;;  %vm438_vm3 = vcmp.lt.s32.totalorder %v437_v55, 2 }
  0xdb   : > { %712 = vmatpush.msra.mxu1 %v624_v50  ;;  %693 = vmatpush.msra.mxu0 %v619_v56  ;;  %v1077_v43 = vld [vmem:[#allocation5 + $0x760] sm:$0xff] }
  0xdc   : > { %v413_v1 = vmul.f32 %v412_v58, %v410_v57  ;;  %v620_v57 = vld [vmem:[#allocation2 + $0x68] sm:$0xff]  ;;  %733 = vmatpush.msra.mxu2 %v621_v60  ;;  %753 = vmatpush.msra.mxu3 %v622_v61  ;;  %v877_v44 = vld [vmem:[#allocation5 + $0x120] sm:$0xff] }
  0xdd   : > { %713 = vmatpush.msra.mxu1 %v620_v57  ;;  %694 = vmatpush.msra.mxu0 %v615_v63  ;;  %v1073_v47 = vld [vmem:[#allocation5 + $0x740] sm:$0xff] }
  0xde   : > { %v414_v8 = vxor.u32 2147483648, %v413_v1  ;;  %734 = vmatpush.msra.mxu2 %v617_v5  ;;  %754 = vmatpush.msra.mxu3 %v618_v6  ;;  %v873_v48 = vld [vmem:[#allocation5 + $0x100] sm:$0xff] }
  0xdf   : > { %v937_v49 = vld [vmem:[#allocation5 + $0x300] sm:$0xff] }
  0xe0   : > { %v415_v18 = vsel %vm294_vm12, %v414_v8, %v413_v1  ;;  %v616_v1 = vld [vmem:[#allocation2 + $0x48] sm:$0xff]  ;;  %v611_v8 = vld [vmem:[#allocation2 + $0x20] sm:$0xff]  ;;  %735 = vmatpush.msra.mxu2 %v613_v12  ;;  %755 = vmatpush.msra.mxu3 %v614_v13 }
  0xe1   : > { %v2065_v21 = vsel %vm2056_vm13, %v2004_v4, %v415_v18  ;;  %714 = vmatpush.msra.mxu1 %v616_v1  ;;  %695 = vmatpush.msra.mxu0 %v611_v8  ;;  %v897_v4 = vld [vmem:[#allocation5 + $0x1c0] sm:$0xff] }
  0xe2   : > { %v420_v24 = vmul.f32 %v2065_v21, %v2065_v21  ;;  %736 = vmatpush.msra.mxu2 %v609_v15  ;;  %756 = vmatpush.msra.mxu3 %v610_v16  ;;  %v1005_v50 = vld [vmem:[#allocation5 + $0x520] sm:$0xff]  ;;  %v966_v15 = vld [vmem:[#allocation5 + $0x3e8] sm:$0xff] }
  0xe3   : > { %715 = vmatpush.msra.mxu1 %v612_v9  ;;  %696 = vmatpush.msra.mxu0 %v607_v7  ;;  %v933_v53 = vld [vmem:[#allocation5 + $0x2e0] sm:$0xff] }
  0xe4   : > { %v421_v0 = vmul.f32 -0.001358992, %v420_v24  ;;  %v428_v27 = vmul.f32 -0.00019511016, %v420_v24  ;;  %1147 = vmatpush.msrb.mxu2 %v1029_v29  ;;  %1167 = vmatpush.msrb.mxu3 %v1093_v31  ;;  %v1001_v54 = vld [vmem:[#allocation5 + $0x500] sm:$0xff]  ;;  %v890_v31 = vld [vmem:[#allocation5 + $0x188] sm:$0xff] }
  0xe5   : > { %1107 = vmatpush.msrb.mxu0 %v901_v25  ;;  %v1065_v55 = vld [vmem:[#allocation5 + $0x700] sm:$0xff] }
  0xe6   : > { %v422_v34 = vadd.f32 0.041655596, %v421_v0  ;;  %v429_v35 = vadd.f32 0.008332121, %v428_v27  ;;  %v961_v0 = vld [vmem:[#allocation5 + $0x3c0] sm:$0xff] }
  0xe7   : > { %v893_v27 = vld [vmem:[#allocation5 + $0x1a0] sm:$0xff]  ;;  %1108 = vmatpush.msrb.mxu0 %v897_v4 }
  0xe8   : > { %v423_v39 = vmul.f32 %v422_v34, %v420_v24  ;;  %v430_v40 = vmul.f32 %v429_v35, %v420_v24  ;;  %v1025_v34 = vld [vmem:[#allocation5 + $0x5c0] sm:$0xff] }
  0xe9   : > { %v1089_v35 = vld [vmem:[#allocation5 + $0x7c0] sm:$0xff]  ;;  %1109 = vmatpush.msrb.mxu0 %v893_v27  ;;  %1148 = vmatpush.msrb.mxu2 %v1025_v34  ;;  %v894_v27 = vld [vmem:[#allocation5 + $0x1a8] sm:$0xff] }
  0xea   : > { %v424_v45 = vadd.f32 -0.4999988, %v423_v39  ;;  %v431_v46 = vadd.f32 -0.16666654, %v430_v40  ;;  %1168 = vmatpush.msrb.mxu3 %v1089_v35  ;;  %v1017_v39 = vld [vmem:[#allocation5 + $0x580] sm:$0xff]  ;;  %v1030_v34 = vld [vmem:[#allocation5 + $0x5e8] sm:$0xff] }
  0xeb   : > { %1110 = vmatpush.msrb.mxu0 %v889_v30  ;;  %v1081_v40 = vld [vmem:[#allocation5 + $0x780] sm:$0xff]  ;;  %1149 = vmatpush.msrb.mxu2 %v1021_v36  ;;  %v1094_v35 = vld [vmem:[#allocation5 + $0x7e8] sm:$0xff] }
  0xec   : > { %v425_v51 = vmul.f32 %v424_v45, %v420_v24  ;;  %v432_v52 = vmul.f32 %v431_v46, %v420_v24  ;;  %v608_v24 = vld [vmem:[#allocation2 + $0x8] sm:$0xff]  ;;  %1169 = vmatpush.msrb.mxu3 %v1085_v37  ;;  %v941_v45 = vld [vmem:[#allocation5 + $0x320] sm:$0xff] }
  0xed   : > { %716 = vmatpush.msra.mxu1 %v608_v24  ;;  %1111 = vmatpush.msrb.mxu0 %v885_v14  ;;  %v1009_v46 = vld [vmem:[#allocation5 + $0x540] sm:$0xff]  ;;  %v902_v24 = vld [vmem:[#allocation5 + $0x1e8] sm:$0xff] }
  0xee   : > { %v426_v58 = vadd.f32 1.0, %v425_v51  ;;  %v433_v59 = vadd.f32 1.0, %v432_v52  ;;  %1150 = vmatpush.msrb.mxu2 %v1017_v39  ;;  %1170 = vmatpush.msrb.mxu3 %v1081_v40  ;;  %v1069_v51 = vld [vmem:[#allocation5 + $0x720] sm:$0xff]  ;;  %v886_v36 = vld [vmem:[#allocation5 + $0x168] sm:$0xff] }
  0xef   : > { %1127 = vmatpush.msrb.mxu1 %v965_v26  ;;  %1112 = vmatpush.msrb.mxu0 %v881_v41  ;;  %v869_v52 = vld [vmem:[#allocation5 + $0xe0] sm:$0xff]  ;;  %v898_v26 = vld [vmem:[#allocation5 + $0x1c8] sm:$0xff] }
  0xf0   : > { %v434_v2 = vmul.f32 %v433_v59, %v2065_v21  ;;  %v443_v3 = vxor.u32 2147483648, %v426_v58  ;;  %1151 = vmatpush.msrb.mxu2 %v1013_v32  ;;  %1171 = vmatpush.msrb.mxu3 %v1077_v43  ;;  %v865_v56 = vld [vmem:[#allocation5 + $0xc0] sm:$0xff]  ;;  %v950_v37 = vld [vmem:[#allocation5 + $0x368] sm:$0xff] }
  0xf1   : > { %1128 = vmatpush.msrb.mxu1 %v961_v0  ;;  %1113 = vmatpush.msrb.mxu0 %v877_v44  ;;  %v929_v57 = vld [vmem:[#allocation5 + $0x2c0] sm:$0xff]  ;;  %v1026_v14 = vld [vmem:[#allocation5 + $0x5c8] sm:$0xff] }
  0xf2   : > { %v440_v10 = vxor.u32 2147483648, %v434_v2  ;;  %v444_v11 = vsel %vm442_vm14, %v443_v3, %v434_v2  ;;  %v598_v18 = vsel %vm596_vm2, %v443_v3, %v434_v2  ;;  %1152 = vmatpush.msrb.mxu2 %v1009_v46  ;;  %1172 = vmatpush.msrb.mxu3 %v1073_v47  ;;  %v1061_v59 = vld [vmem:[#allocation5 + $0x6e0] sm:$0xff]  ;;  %v882_v39 = vld [vmem:[#allocation5 + $0x148] sm:$0xff] }
  0xf3   : > { %1129 = vmatpush.msrb.mxu1 %v957_v28  ;;  %1114 = vmatpush.msrb.mxu0 %v873_v48  ;;  %v861_v60 = vld [vmem:[#allocation5 + $0xa0] sm:$0xff]  ;;  %v958_v28 = vld [vmem:[#allocation5 + $0x3a8] sm:$0xff] }
  0xf4   : > { %v595_v17 = vsel %vm593_vm1, %v426_v58, %v440_v10  ;;  %v441_v19 = vsel %vm439_vm15, %v426_v58, %v440_v10  ;;  %1153 = vmatpush.msrb.mxu2 %v1005_v50  ;;  %1173 = vmatpush.msrb.mxu3 %v1069_v51  ;;  %v997_v58 = vld [vmem:[#allocation5 + $0x4e0] sm:$0xff]  ;;  %v946_v40 = vld [vmem:[#allocation5 + $0x348] sm:$0xff] }
  0xf5   : > { %v599_v20 = vsel %vm592_vm0, %v595_v17, %v598_v18  ;;  %v445_v21 = vsel %vm438_vm3, %v441_v19, %v444_v11  ;;  %1130 = vmatpush.msrb.mxu1 %v953_v33  ;;  %1115 = vmatpush.msrb.mxu0 %v869_v52  ;;  %v925_v61 = vld [vmem:[#allocation5 + $0x2a0] sm:$0xff]  ;;  %v954_v33 = vld [vmem:[#allocation5 + $0x388] sm:$0xff] }
  0xf6   : > { %v600_v22 = vsel %vm435_vm4, nan, %v599_v20  ;;  %v2076_v23 = vsel %vm435_vm4, nan, %v445_v21  ;;  %1154 = vmatpush.msrb.mxu2 %v1001_v54  ;;  %1174 = vmatpush.msrb.mxu3 %v1065_v55  ;;  %v1057_v63 = vld [vmem:[#allocation5 + $0x6c0] sm:$0xff]  ;;  %v1022_v41 = vld [vmem:[#allocation5 + $0x5a8] sm:$0xff] }
  0xf7   : > { %602 = vrot.lane.b32.xlu0 %v600_v22, %s1886_s14  ;;  %1131 = vmatpush.msrb.mxu1 %v949_v38  ;;  %v857_v1 = vld [vmem:[#allocation5 + $0x80] sm:$0xff]  ;;  %v1090_v38 = vld [vmem:[#allocation5 + $0x7c8] sm:$0xff]  ;;  %s1819_s14 = scalar_lea.hbm %s1818_s13, 32 }
  0xf8   : > { %1116 = vmatpush.msrb.mxu0 %v865_v56  ;;  %v921_v2 = vld [vmem:[#allocation5 + $0x280] sm:$0xff]  ;;  %1155 = vmatpush.msrb.mxu2 %v997_v58  ;;  %v878_v32 = vld [vmem:[#allocation5 + $0x128] sm:$0xff]  ;;  %p1820_p0 = scmp.ne.s32.totalorder %s1818_s13, %s1819_s14  ;;  %p1825_p4 = scmp.lt.s32.totalorder %s1823_s17, %s1819_s14 }
  0xf9   : > { %1132 = vmatpush.msrb.mxu1 %v945_v42  ;;  %1175 = vmatpush.msrb.mxu3 %v1061_v59  ;;  %v989_v3 = vld [vmem:[#allocation5 + $0x4a0] sm:$0xff]  ;;  %v1086_v42 = vld [vmem:[#allocation5 + $0x7a8] sm:$0xff] }
  0xfa   : > { %1117 = vmatpush.msrb.mxu0 %v861_v60  ;;  %v1053_v5 = vld [vmem:[#allocation5 + $0x6a0] sm:$0xff]  ;;  %1156 = vmatpush.msrb.mxu2 %v993_v62  ;;  %v942_v43 = vld [vmem:[#allocation5 + $0x328] sm:$0xff]  ;;  %p1821_p1 = pnand %p1820_p0, %p1960_p5  ;;  %p1826_p7 = por %p1825_p4, %p1824_p3 }
  0xfb   : > { %1133 = vmatpush.msrb.mxu1 %v941_v45  ;;  %v853_v6 = vld [vmem:[#allocation5 + $0x60] sm:$0xff]  ;;  %1176 = vmatpush.msrb.mxu3 %v1057_v63  ;;  %v1018_v44 = vld [vmem:[#allocation5 + $0x588] sm:$0xff] }
  0xfc   : > { %v917_v8 = vld [vmem:[#allocation5 + $0x260] sm:$0xff]  ;;  %1118 = vmatpush.msrb.mxu0 %v857_v1  ;;  %1157 = vmatpush.msrb.mxu2 %v989_v3  ;;  %v1082_v45 = vld [vmem:[#allocation5 + $0x788] sm:$0xff]  ;;  %p1822_p2 = pneg %p1821_p1 }
  0xfd   : > { %1134 = vmatpush.msrb.mxu1 %v937_v49  ;;  %v985_v9 = vld [vmem:[#allocation5 + $0x480] sm:$0xff]  ;;  %1177 = vmatpush.msrb.mxu3 %v1053_v5  ;;  %v874_v46 = vld [vmem:[#allocation5 + $0x108] sm:$0xff] }
  0xfe   : > { %v1049_v10 = vld [vmem:[#allocation5 + $0x680] sm:$0xff]  ;;  %1119 = vmatpush.msrb.mxu0 %v853_v6  ;;  %1158 = vmatpush.msrb.mxu2 %v985_v9  ;;  %v938_v47 = vld [vmem:[#allocation5 + $0x308] sm:$0xff]  ;;  %p1827_p8 = pnand %p1826_p7, %p1822_p2 }
  0xff   : > { %1135 = vmatpush.msrb.mxu1 %v933_v53  ;;  %v849_v11 = vld [vmem:[#allocation5 + $0x40] sm:$0xff]  ;;  %1178 = vmatpush.msrb.mxu3 %v1049_v10  ;;  %v1014_v48 = vld [vmem:[#allocation5 + $0x568] sm:$0xff] }
 0x100   : > { %v913_v12 = vld [vmem:[#allocation5 + $0x240] sm:$0xff]  ;;  %1120 = vmatpush.msrb.mxu0 %v849_v11  ;;  %v1078_v49 = vld [vmem:[#allocation5 + $0x768] sm:$0xff] }
 0x101   : > { %1136 = vmatpush.msrb.mxu1 %v929_v57  ;;  %v845_v13 = vld [vmem:[#allocation5 + $0x20] sm:$0xff]  ;;  %v870_v50 = vld [vmem:[#allocation5 + $0xe8] sm:$0xff] }
 0x102   : > { %v909_v17 = vld [vmem:[#allocation5 + $0x220] sm:$0xff]  ;;  %1121 = vmatpush.msrb.mxu0 %v845_v13  ;;  %v934_v51 = vld [vmem:[#allocation5 + $0x2e8] sm:$0xff] }
 0x103   : > { %1137 = vmatpush.msrb.mxu1 %v925_v61  ;;  %v841_v20 = vld [vmem:[#allocation5] sm:$0xff]  ;;  %v1010_v52 = vld [vmem:[#allocation5 + $0x548] sm:$0xff] }
 0x104   : > { %v905_v21 = vld [vmem:[#allocation5 + $0x200] sm:$0xff]  ;;  %1122 = vmatpush.msrb.mxu0 %v841_v20  ;;  %v1074_v53 = vld [vmem:[#allocation5 + $0x748] sm:$0xff] }
 0x105   : > { %1138 = vmatpush.msrb.mxu1 %v921_v2  ;;  %v981_v22 = vld [vmem:[#allocation5 + $0x460] sm:$0xff]  ;;  %v866_v54 = vld [vmem:[#allocation5 + $0xc8] sm:$0xff] }
 0x106   : > { %v1045_v7 = vld [vmem:[#allocation5 + $0x660] sm:$0xff]  ;;  %1159 = vmatpush.msrb.mxu2 %v981_v22  ;;  %v930_v55 = vld [vmem:[#allocation5 + $0x2c8] sm:$0xff] }
 0x107   : > { %1139 = vmatpush.msrb.mxu1 %v917_v8  ;;  %1179 = vmatpush.msrb.mxu3 %v1045_v7  ;;  %v977_v16 = vld [vmem:[#allocation5 + $0x440] sm:$0xff]  ;;  %v1006_v56 = vld [vmem:[#allocation5 + $0x528] sm:$0xff] }
 0x108   : > { %v1041_v25 = vld [vmem:[#allocation5 + $0x640] sm:$0xff]  ;;  %1160 = vmatpush.msrb.mxu2 %v977_v16  ;;  %v1070_v57 = vld [vmem:[#allocation5 + $0x728] sm:$0xff] }
 0x109   : > { %1140 = vmatpush.msrb.mxu1 %v913_v12  ;;  %1180 = vmatpush.msrb.mxu3 %v1041_v25  ;;  %v973_v4 = vld [vmem:[#allocation5 + $0x420] sm:$0xff]  ;;  %v862_v58 = vld [vmem:[#allocation5 + $0xa8] sm:$0xff] }
 0x10a   : > { %v1037_v0 = vld [vmem:[#allocation5 + $0x620] sm:$0xff]  ;;  %1161 = vmatpush.msrb.mxu2 %v973_v4  ;;  %v926_v59 = vld [vmem:[#allocation5 + $0x2a8] sm:$0xff] }
 0x10b   : > { %1141 = vmatpush.msrb.mxu1 %v909_v17  ;;  %1181 = vmatpush.msrb.mxu3 %v1037_v0  ;;  %v969_v29 = vld [vmem:[#allocation5 + $0x400] sm:$0xff]  ;;  %v1002_v60 = vld [vmem:[#allocation5 + $0x508] sm:$0xff] }
 0x10c   : > { %v1033_v30 = vld [vmem:[#allocation5 + $0x600] sm:$0xff]  ;;  %1162 = vmatpush.msrb.mxu2 %v969_v29  ;;  %v1066_v62 = vld [vmem:[#allocation5 + $0x708] sm:$0xff] }
 0x10d   : > { %1142 = vmatpush.msrb.mxu1 %v905_v21  ;;  %1182 = vmatpush.msrb.mxu3 %v1033_v30  ;;  %v2082_v61 = vld [vmem:[%s2198_s3] sm:$0xf]  ;;  %v858_v63 = vld [vmem:[#allocation5 + $0x88] sm:$0xff] }
 0x10e   : > { %v922_v1 = vld [vmem:[#allocation5 + $0x288] sm:$0xff]  ;;  %v673_v5 = vperm.slane %v2082_v61, 0  ;;  %v674_v6 = vperm.slane %v2082_v61, 1  ;;  %v675_v0 = vperm.slane %v2082_v61, 2 }
 0x10f   : > { %v998_v2 = vld [vmem:[#allocation5 + $0x4e8] sm:$0xff] }
 0x110   : > { %v1062_v3 = vld [vmem:[#allocation5 + $0x6e8] sm:$0xff] }
 0x111   : > { %v854_v8 = vld [vmem:[#allocation5 + $0x68] sm:$0xff] }
 0x112   : > { %v918_v9 = vld [vmem:[#allocation5 + $0x268] sm:$0xff] }
 0x113   : > { %v994_v10 = vld [vmem:[#allocation5 + $0x4c8] sm:$0xff] }
 0x114   : > { %v1058_v11 = vld [vmem:[#allocation5 + $0x6c8] sm:$0xff] }
 0x115   : > { %v850_v12 = vld [vmem:[#allocation5 + $0x48] sm:$0xff] }
 0x116   : > { %v914_v13 = vld [vmem:[#allocation5 + $0x248] sm:$0xff] }
 0x117   : > { %v990_v17 = vld [vmem:[#allocation5 + $0x4a8] sm:$0xff] }
 0x118   : > { %v1054_v20 = vld [vmem:[#allocation5 + $0x6a8] sm:$0xff] }
 0x119   : > { %v846_v7 = vld [vmem:[#allocation5 + $0x28] sm:$0xff] }
 0x11a   : > { %v1050_v16 = vld [vmem:[#allocation5 + $0x688] sm:$0xff] }
 0x11b   : > { %v906_v4 = vld [vmem:[#allocation5 + $0x208] sm:$0xff] }
 0x11c   : > { %v1046_v29 = vld [vmem:[#allocation5 + $0x668] sm:$0xff] }
 0x11d   : > { %v978_v30 = vld [vmem:[#allocation5 + $0x448] sm:$0xff] }
 0x169   : > { %v603_v18 = vpop.permute.xlu0 %602 }
 0x16a   : > { %v606_v19 = vsel %vm605_vm5, %v2076_v23, %v603_v18  ;;  %v962_v23 = vld [vmem:[#allocation5 + $0x3c8] sm:$0xff] }
 0x16b   : > { %697 = vmatmul.f32.vlgmr.msra.gmra.mxu0 %v606_v19  ;;  %717 = vmatmul.f32.vlgmr.msra.gmra.mxu1 %v606_v19 }
 0x16c   : > { %737 = vmatmul.f32.vlgmr.msra.gmra.mxu2 %v606_v19  ;;  %757 = vmatmul.f32.vlgmr.msra.gmra.mxu3 %v606_v19 }
 0x16d   : > { %1187 = vmatpush.msra.mxu0 %v902_v24  ;;  %1207 = vmatpush.msra.mxu1 %v966_v15  ;;  %v910_v24 = vld [vmem:[#allocation5 + $0x228] sm:$0xff] }
 0x16e   : > { %1227 = vmatpush.msra.mxu2 %v1030_v34  ;;  %1247 = vmatpush.msra.mxu3 %v1094_v35  ;;  %v986_v15 = vld [vmem:[#allocation5 + $0x488] sm:$0xff] }
 0x16f   : > { %1188 = vmatpush.msra.mxu0 %v898_v26  ;;  %1208 = vmatpush.msra.mxu1 %v962_v23  ;;  %v842_v23 = vld [vmem:[#allocation5 + $0x8] sm:$0xff] }
 0x170   : > { %1228 = vmatpush.msra.mxu2 %v1026_v14  ;;  %1248 = vmatpush.msra.mxu3 %v1090_v38  ;;  %v974_v35 = vld [vmem:[#allocation5 + $0x428] sm:$0xff] }
 0x171   : > { %1189 = vmatpush.msra.mxu0 %v894_v27  ;;  %1209 = vmatpush.msra.mxu1 %v958_v28  ;;  %v676_v27 = vperm.slane %v2082_v61, 3  ;;  %v982_v28 = vld [vmem:[#allocation5 + $0x468] sm:$0xff] }
 0x172   : > { %1229 = vmatpush.msra.mxu2 %v1022_v41  ;;  %1249 = vmatpush.msra.mxu3 %v1086_v42  ;;  %v970_v38 = vld [vmem:[#allocation5 + $0x408] sm:$0xff] }
 0x173   : > { %1190 = vmatpush.msra.mxu0 %v890_v31  ;;  %1210 = vmatpush.msra.mxu1 %v954_v33  ;;  %v1042_v31 = vld [vmem:[#allocation5 + $0x648] sm:$0xff] }
 0x174   : > { %1230 = vmatpush.msra.mxu2 %v1018_v44  ;;  %1250 = vmatpush.msra.mxu3 %v1082_v45 }
 0x175   : > { %1191 = vmatpush.msra.mxu0 %v886_v36  ;;  %1211 = vmatpush.msra.mxu1 %v950_v37  ;;  %v1038_v36 = vld [vmem:[#allocation5 + $0x628] sm:$0xff] }
 0x176   : > { %1231 = vmatpush.msra.mxu2 %v1014_v48  ;;  %1251 = vmatpush.msra.mxu3 %v1078_v49 }
 0x177   : > { %1192 = vmatpush.msra.mxu0 %v882_v39  ;;  %1212 = vmatpush.msra.mxu1 %v946_v40  ;;  %v1034_v39 = vld [vmem:[#allocation5 + $0x608] sm:$0xff] }
 0x178   : > { %1232 = vmatpush.msra.mxu2 %v1010_v52  ;;  %1252 = vmatpush.msra.mxu3 %v1074_v53 }
 0x179   : > { %1193 = vmatpush.msra.mxu0 %v878_v32  ;;  %1213 = vmatpush.msra.mxu1 %v942_v43 }
 0x17a   : > { %1233 = vmatpush.msra.mxu2 %v1006_v56  ;;  %1253 = vmatpush.msra.mxu3 %v1070_v57 }
 0x17b   : > { %1194 = vmatpush.msra.mxu0 %v874_v46  ;;  %1214 = vmatpush.msra.mxu1 %v938_v47 }
 0x17c   : > { %1234 = vmatpush.msra.mxu2 %v1002_v60  ;;  %1254 = vmatpush.msra.mxu3 %v1066_v62 }
 0x17d   : > { %1195 = vmatpush.msra.mxu0 %v870_v50  ;;  %1215 = vmatpush.msra.mxu1 %v934_v51 }
 0x17e   : > { %1235 = vmatpush.msra.mxu2 %v998_v2  ;;  %1255 = vmatpush.msra.mxu3 %v1062_v3 }
 0x17f   : > { %1196 = vmatpush.msra.mxu0 %v866_v54  ;;  %1216 = vmatpush.msra.mxu1 %v930_v55 }
 0x180   : > { %1236 = vmatpush.msra.mxu2 %v994_v10  ;;  %1256 = vmatpush.msra.mxu3 %v1058_v11 }
 0x181   : > { %1197 = vmatpush.msra.mxu0 %v862_v58  ;;  %1217 = vmatpush.msra.mxu1 %v926_v59 }
 0x182   : > { %1237 = vmatpush.msra.mxu2 %v990_v17  ;;  %1257 = vmatpush.msra.mxu3 %v1054_v20 }
 0x183   : > { %1198 = vmatpush.msra.mxu0 %v858_v63  ;;  %1218 = vmatpush.msra.mxu1 %v922_v1 }
 0x184   : > { %1238 = vmatpush.msra.mxu2 %v986_v15  ;;  %1258 = vmatpush.msra.mxu3 %v1050_v16  ;;  %v967_v15 = vld [vmem:[#allocation5 + $0x3f0] sm:$0xff] }
 0x185   : > { %1199 = vmatpush.msra.mxu0 %v854_v8  ;;  %1219 = vmatpush.msra.mxu1 %v918_v9 }
 0x186   : > { %1239 = vmatpush.msra.mxu2 %v982_v28  ;;  %1259 = vmatpush.msra.mxu3 %v1046_v29  ;;  %v959_v29 = vld [vmem:[#allocation5 + $0x3b0] sm:$0xff] }
 0x187   : > { %1200 = vmatpush.msra.mxu0 %v850_v12  ;;  %1220 = vmatpush.msra.mxu1 %v914_v13 }
 0x188   : > { %1240 = vmatpush.msra.mxu2 %v978_v30  ;;  %1260 = vmatpush.msra.mxu3 %v1042_v31 }
 0x189   : > { %1201 = vmatpush.msra.mxu0 %v846_v7  ;;  %1221 = vmatpush.msra.mxu1 %v910_v24 }
 0x18a   : > { %1241 = vmatpush.msra.mxu2 %v974_v35  ;;  %1261 = vmatpush.msra.mxu3 %v1038_v36  ;;  %v955_v36 = vld [vmem:[#allocation5 + $0x390] sm:$0xff] }
 0x18b   : > { %1202 = vmatpush.msra.mxu0 %v842_v23  ;;  %1222 = vmatpush.msra.mxu1 %v906_v4 }
 0x18c   : > { %1242 = vmatpush.msra.mxu2 %v970_v38  ;;  %1262 = vmatpush.msra.mxu3 %v1034_v39  ;;  %v1031_v38 = vld [vmem:[#allocation5 + $0x5f0] sm:$0xff] }
 0x1e8   : > { %v698_v18 = vpop.f32.mrf.mxu0  ;;  %v718_v19 = vpop.f32.mrf.mxu1 }
 0x1e9   : > { %v2086_v21 = vadd.f32 %v698_v18, %v673_v5  ;;  %v2088_v22 = vadd.f32 %v718_v19, %v674_v6  ;;  %v903_v19 = vld [vmem:[#allocation5 + $0x1f0] sm:$0xff] }
 0x1eb   : > { %v1625_v25 = vmul.f32 -1.442695, %v2086_v21  ;;  %v1626_v26 = vmul.f32 -1.442695, %v2088_v22 }
 0x1ed   : > { %1711 = vpow2.f32 %v1625_v25 }
 0x1ee   : > { %1713 = vpow2.f32 %v1626_v26 }
 0x1ef   : > { %v738_v33 = vpop.f32.mrf.mxu2  ;;  %v758_v34 = vpop.f32.mrf.mxu3 }
 0x1f0   : > { %v2094_v37 = vadd.f32 %v738_v33, %v675_v0  ;;  %v2096_v14 = vadd.f32 %v758_v34, %v676_v27  ;;  %v895_v0 = vld [vmem:[#allocation5 + $0x1b0] sm:$0xff] }
 0x1f1   : > { %v891_v33 = vld [vmem:[#allocation5 + $0x190] sm:$0xff] }
 0x1f2   : > { %v1627_v40 = vmul.f32 -1.442695, %v2094_v37  ;;  %v1628_v41 = vmul.f32 -1.442695, %v2096_v14 }
 0x1f3   : > { %v1712_v42 = vpop.eup %1711 }
 0x1f4   : > { %v1714_v32 = vpop.eup %1713  ;;  %v773_v43 = vadd.f32 1.0, %v1712_v42  ;;  %1715 = vpow2.f32 %v1627_v40  ;;  %v887_v42 = vld [vmem:[#allocation5 + $0x170] sm:$0xff] }
 0x1f5   : > { %v774_v44 = vadd.f32 1.0, %v1714_v32  ;;  %1717 = vpow2.f32 %v1628_v41  ;;  %v1095_v41 = vld [vmem:[#allocation5 + $0x7f0] sm:$0xff] }
 0x1f6   : > { %1719 = vrcp.f32 %v773_v43  ;;  %v786_v54 = vand.u32 2147483647, %v773_v43  ;;  %v788_v55 = vand.u32 2147483648, %v773_v43  ;;  %vm782_vm8 = vweird.f32 %v773_v43  ;;  %v951_v32 = vld [vmem:[#allocation5 + $0x370] sm:$0xff] }
 0x1f7   : > { %1721 = vrcp.f32 %v774_v44  ;;  %v801_v58 = vand.u32 2147483647, %v774_v44  ;;  %v803_v59 = vand.u32 2147483648, %v774_v44  ;;  %vm797_vm10 = vweird.f32 %v774_v44 }
 0x1f8   : > { %v789_v63 = vor.u32 1.1754944e-38, %v788_v55  ;;  %vm787_vm11 = vcmp.eq.f32.partialorder %v786_v54, 8.507059e+37  ;;  %v1079_v54 = vld [vmem:[#allocation5 + $0x770] sm:$0xff] }
 0x1f9   : > { %vm802_vm13 = vcmp.eq.f32.partialorder %v801_v58, 8.507059e+37  ;;  %v804_v6 = vor.u32 1.1754944e-38, %v803_v59  ;;  %v871_v55 = vld [vmem:[#allocation5 + $0xf0] sm:$0xff] }
 0x1fa   : > { %v1716_v45 = vpop.eup %1715  ;;  %v1075_v58 = vld [vmem:[#allocation5 + $0x750] sm:$0xff] }
 0x1fb   : > { %v1718_v46 = vpop.eup %1717  ;;  %v2100_v47 = vadd.f32 1.0, %v1716_v45  ;;  %v1023_v45 = vld [vmem:[#allocation5 + $0x5b0] sm:$0xff] }
 0x1fc   : > { %v1720_v48 = vpop.eup %1719  ;;  %v2102_v49 = vadd.f32 1.0, %v1718_v46  ;;  %v1087_v46 = vld [vmem:[#allocation5 + $0x7b0] sm:$0xff] }
 0x1fd   : > { %v1722_v50 = vpop.eup %1721  ;;  %v778_v51 = vmul.f32 %v1720_v48, %v773_v43  ;;  %1723 = vrcp.f32 %v2100_v47  ;;  %vm783_vm6 = vweird.f32 %v1720_v48  ;;  %v816_v17 = vand.u32 2147483647, %v2100_v47  ;;  %v1091_v43 = vld [vmem:[#allocation5 + $0x7d0] sm:$0xff] }
 0x1fe   : > { %v793_v52 = vmul.f32 %v1722_v50, %v774_v44  ;;  %1725 = vrcp.f32 %v2102_v49  ;;  %vm798_vm7 = vweird.f32 %v1722_v50  ;;  %vm784_vm9 = vmor %vm782_vm8, %vm783_vm6  ;;  %v818_v18 = vand.u32 2147483648, %v2100_v47  ;;  %v883_v44 = vld [vmem:[#allocation5 + $0x150] sm:$0xff] }
 0x1ff   : > { %v779_v53 = vsub.f32 1.0, %v778_v51  ;;  %vm799_vm12 = vmor %vm797_vm10, %vm798_vm7  ;;  %vm812_vm15 = vweird.f32 %v2100_v47  ;;  %v833_v16 = vand.u32 2147483648, %v2102_v49  ;;  %v831_v23 = vand.u32 2147483647, %v2102_v49  ;;  %v875_v51 = vld [vmem:[#allocation5 + $0x110] sm:$0xff] }
 0x200   : > { %v794_v56 = vsub.f32 1.0, %v793_v52  ;;  %v819_v4 = vor.u32 1.1754944e-38, %v818_v18  ;;  %vm817_vm2 = vcmp.eq.f32.partialorder %v816_v17, 8.507059e+37  ;;  %vm827_vm3 = vweird.f32 %v2102_v49  ;;  %v939_v52 = vld [vmem:[#allocation5 + $0x310] sm:$0xff] }
 0x201   : > { %v780_v57 = vmul.f32 %v1720_v48, %v779_v53  ;;  %v834_v31 = vor.u32 1.1754944e-38, %v833_v16  ;;  %vm832_vm5 = vcmp.eq.f32.partialorder %v831_v23, 8.507059e+37  ;;  %v1015_v53 = vld [vmem:[#allocation5 + $0x570] sm:$0xff] }
 0x202   : > { %v795_v60 = vmul.f32 %v1722_v50, %v794_v56  ;;  %v935_v56 = vld [vmem:[#allocation5 + $0x2f0] sm:$0xff] }
 0x203   : > { %v1724_v61 = vpop.eup %1723  ;;  %v781_v62 = vadd.f32 %v1720_v48, %v780_v57  ;;  %v1011_v57 = vld [vmem:[#allocation5 + $0x550] sm:$0xff] }
 0x204   : > { %v796_v1 = vadd.f32 %v1722_v50, %v795_v60  ;;  %v808_v2 = vmul.f32 %v1724_v61, %v2100_v47  ;;  %v1726_v3 = vpop.eup %1725  ;;  %vm813_vm14 = vweird.f32 %v1724_v61  ;;  %v879_v47 = vld [vmem:[#allocation5 + $0x130] sm:$0xff] }
 0x205   : > { %v785_v5 = vsel %vm784_vm9, %v1720_v48, %v781_v62  ;;  %v823_v11 = vmul.f32 %v1726_v3, %v2102_v49  ;;  %vm828_vm0 = vweird.f32 %v1726_v3  ;;  %vm814_vm1 = vmor %vm812_vm15, %vm813_vm14  ;;  %v943_v48 = vld [vmem:[#allocation5 + $0x330] sm:$0xff] }
 0x206   : > { %v790_v8 = vsel %vm787_vm11, %v789_v63, %v785_v5  ;;  %v800_v9 = vsel %vm799_vm12, %v1722_v50, %v796_v1  ;;  %v809_v10 = vsub.f32 1.0, %v808_v2  ;;  %vm829_vm4 = vmor %vm827_vm3, %vm828_vm0  ;;  %v1019_v49 = vld [vmem:[#allocation5 + $0x590] sm:$0xff] }
 0x207   : > { %v2109_v12 = vmul.f32 %v790_v8, %v2086_v21  ;;  %v805_v13 = vsel %vm802_vm13, %v804_v6, %v800_v9  ;;  %v824_v24 = vsub.f32 1.0, %v823_v11  ;;  %v899_v21 = vld [vmem:[#allocation5 + $0x1d0] sm:$0xff] }
 0x208   : > { %v2114_v20 = vmul.f32 %v805_v13, %v2088_v22  ;;  %v810_v7 = vmul.f32 %v1724_v61, %v809_v10  ;;  %v963_v22 = vld [vmem:[#allocation5 + $0x3d0] sm:$0xff] }
 0x209   : > { %1123 = vmatmul.f32.vlgmr.msrb.gmra.mxu0 %v2109_v12  ;;  %v825_v26 = vmul.f32 %v1726_v3, %v824_v24  ;;  %v1083_v50 = vld [vmem:[#allocation5 + $0x790] sm:$0xff] }
 0x20a   : > { %v811_v25 = vadd.f32 %v1724_v61, %v810_v7  ;;  %1143 = vmatmul.f32.vlgmr.msrb.gmra.mxu1 %v2114_v20  ;;  %1267 = vmatpush.msrb.mxu0 %v903_v19  ;;  %v867_v59 = vld [vmem:[#allocation5 + $0xd0] sm:$0xff] }
 0x20b   : > { %1287 = vmatpush.msrb.mxu1 %v967_v15  ;;  %v826_v28 = vadd.f32 %v1726_v3, %v825_v26  ;;  %v931_v60 = vld [vmem:[#allocation5 + $0x2d0] sm:$0xff] }
 0x20c   : > { %v815_v27 = vsel %vm814_vm1, %v1724_v61, %v811_v25  ;;  %1268 = vmatpush.msrb.mxu0 %v899_v21  ;;  %v1007_v61 = vld [vmem:[#allocation5 + $0x530] sm:$0xff] }
 0x20d   : > { %v820_v30 = vsel %vm817_vm2, %v819_v4, %v815_v27  ;;  %1288 = vmatpush.msrb.mxu1 %v963_v22  ;;  %v830_v35 = vsel %vm829_vm4, %v1726_v3, %v826_v28  ;;  %v1071_v62 = vld [vmem:[#allocation5 + $0x730] sm:$0xff]  ;;  %v968_v27 = vld [vmem:[#allocation5 + $0x3f8] sm:$0xff] }
 0x20e   : > { %v2124_v34 = vmul.f32 %v820_v30, %v2094_v37  ;;  %1269 = vmatpush.msrb.mxu0 %v895_v0  ;;  %v835_v39 = vsel %vm832_vm5, %v834_v31, %v830_v35  ;;  %v1027_v37 = vld [vmem:[#allocation5 + $0x5d0] sm:$0xff]  ;;  %v904_v0 = vld [vmem:[#allocation5 + $0x1f8] sm:$0xff] }
 0x20f   : > { %1289 = vmatpush.msrb.mxu1 %v959_v29  ;;  %v2127_v40 = vmul.f32 %v835_v39, %v2096_v14  ;;  %v947_v14 = vld [vmem:[#allocation5 + $0x350] sm:$0xff]  ;;  %v900_v30 = vld [vmem:[#allocation5 + $0x1d8] sm:$0xff] }
 0x210   : > { %1163 = vmatmul.f32.vlgmr.msrb.gmra.mxu2 %v2124_v34  ;;  %1270 = vmatpush.msrb.mxu0 %v891_v33  ;;  %v863_v63 = vld [vmem:[#allocation5 + $0xb0] sm:$0xff]  ;;  %v964_v31 = vld [vmem:[#allocation5 + $0x3d8] sm:$0xff] }
 0x211   : > { %1290 = vmatpush.msrb.mxu1 %v955_v36  ;;  %1307 = vmatpush.msrb.mxu2 %v1031_v38  ;;  %v927_v1 = vld [vmem:[#allocation5 + $0x2b0] sm:$0xff]  ;;  %v896_v36 = vld [vmem:[#allocation5 + $0x1b8] sm:$0xff] }
 0x212   : > { %1183 = vmatmul.f32.vlgmr.msrb.gmra.mxu3 %v2127_v40  ;;  %1203 = vmatmul.f32.vlgmr.msra.gmra.mxu0 %v2109_v12  ;;  %v1003_v2 = vld [vmem:[#allocation5 + $0x510] sm:$0xff]  ;;  %v960_v38 = vld [vmem:[#allocation5 + $0x3b8] sm:$0xff] }
 0x213   : > { %1327 = vmatpush.msrb.mxu3 %v1095_v41  ;;  %1223 = vmatmul.f32.vlgmr.msra.gmra.mxu1 %v2114_v20  ;;  %v1067_v3 = vld [vmem:[#allocation5 + $0x710] sm:$0xff] }
 0x214   : > { %1271 = vmatpush.msrb.mxu0 %v887_v42  ;;  %1291 = vmatpush.msrb.mxu1 %v951_v32  ;;  %v859_v5 = vld [vmem:[#allocation5 + $0x90] sm:$0xff]  ;;  %v892_v42 = vld [vmem:[#allocation5 + $0x198] sm:$0xff] }
 0x215   : > { %1308 = vmatpush.msrb.mxu2 %v1027_v37  ;;  %1328 = vmatpush.msrb.mxu3 %v1091_v43  ;;  %v923_v6 = vld [vmem:[#allocation5 + $0x290] sm:$0xff]  ;;  %v956_v32 = vld [vmem:[#allocation5 + $0x398] sm:$0xff] }
 0x216   : > { %1272 = vmatpush.msrb.mxu0 %v883_v44  ;;  %1292 = vmatpush.msrb.mxu1 %v947_v14  ;;  %v999_v8 = vld [vmem:[#allocation5 + $0x4f0] sm:$0xff]  ;;  %v1032_v37 = vld [vmem:[#allocation5 + $0x5f8] sm:$0xff] }
 0x217   : > { %1309 = vmatpush.msrb.mxu2 %v1023_v45  ;;  %1329 = vmatpush.msrb.mxu3 %v1087_v46  ;;  %v1063_v9 = vld [vmem:[#allocation5 + $0x6f0] sm:$0xff]  ;;  %v1096_v43 = vld [vmem:[#allocation5 + $0x7f8] sm:$0xff] }
 0x218   : > { %1273 = vmatpush.msrb.mxu0 %v879_v47  ;;  %1293 = vmatpush.msrb.mxu1 %v943_v48  ;;  %v855_v10 = vld [vmem:[#allocation5 + $0x70] sm:$0xff]  ;;  %v888_v44 = vld [vmem:[#allocation5 + $0x178] sm:$0xff] }
 0x219   : > { %1310 = vmatpush.msrb.mxu2 %v1019_v49  ;;  %1330 = vmatpush.msrb.mxu3 %v1083_v50  ;;  %v919_v11 = vld [vmem:[#allocation5 + $0x270] sm:$0xff]  ;;  %v952_v14 = vld [vmem:[#allocation5 + $0x378] sm:$0xff] }
 0x21a   : > { %1243 = vmatmul.f32.vlgmr.msra.gmra.mxu2 %v2124_v34  ;;  %1263 = vmatmul.f32.vlgmr.msra.gmra.mxu3 %v2127_v40  ;;  %v995_v13 = vld [vmem:[#allocation5 + $0x4d0] sm:$0xff]  ;;  %v1028_v45 = vld [vmem:[#allocation5 + $0x5d8] sm:$0xff] }
 0x21b   : > { %1274 = vmatpush.msrb.mxu0 %v875_v51  ;;  %1294 = vmatpush.msrb.mxu1 %v939_v52  ;;  %v1059_v17 = vld [vmem:[#allocation5 + $0x6d0] sm:$0xff]  ;;  %v1092_v46 = vld [vmem:[#allocation5 + $0x7d8] sm:$0xff] }
 0x21c   : > { %1311 = vmatpush.msrb.mxu2 %v1015_v53  ;;  %1331 = vmatpush.msrb.mxu3 %v1079_v54  ;;  %v851_v18 = vld [vmem:[#allocation5 + $0x50] sm:$0xff]  ;;  %v884_v47 = vld [vmem:[#allocation5 + $0x158] sm:$0xff] }
 0x21d   : > { %1275 = vmatpush.msrb.mxu0 %v871_v55  ;;  %1295 = vmatpush.msrb.mxu1 %v935_v56  ;;  %v915_v19 = vld [vmem:[#allocation5 + $0x250] sm:$0xff]  ;;  %v948_v48 = vld [vmem:[#allocation5 + $0x358] sm:$0xff] }
 0x21e   : > { %1312 = vmatpush.msrb.mxu2 %v1011_v57  ;;  %1332 = vmatpush.msrb.mxu3 %v1075_v58  ;;  %v991_v7 = vld [vmem:[#allocation5 + $0x4b0] sm:$0xff]  ;;  %v1024_v49 = vld [vmem:[#allocation5 + $0x5b8] sm:$0xff] }
 0x21f   : > { %1276 = vmatpush.msrb.mxu0 %v867_v59  ;;  %1296 = vmatpush.msrb.mxu1 %v931_v60  ;;  %v1055_v24 = vld [vmem:[#allocation5 + $0x6b0] sm:$0xff]  ;;  %v1088_v50 = vld [vmem:[#allocation5 + $0x7b8] sm:$0xff] }
 0x220   : > { %1313 = vmatpush.msrb.mxu2 %v1007_v61  ;;  %1333 = vmatpush.msrb.mxu3 %v1071_v62  ;;  %v847_v15 = vld [vmem:[#allocation5 + $0x30] sm:$0xff]  ;;  %v880_v51 = vld [vmem:[#allocation5 + $0x138] sm:$0xff] }
 0x221   : > { %1277 = vmatpush.msrb.mxu0 %v863_v63  ;;  %1297 = vmatpush.msrb.mxu1 %v927_v1  ;;  %v911_v16 = vld [vmem:[#allocation5 + $0x230] sm:$0xff]  ;;  %v944_v52 = vld [vmem:[#allocation5 + $0x338] sm:$0xff] }
 0x222   : > { %1314 = vmatpush.msrb.mxu2 %v1003_v2  ;;  %1334 = vmatpush.msrb.mxu3 %v1067_v3  ;;  %v987_v21 = vld [vmem:[#allocation5 + $0x490] sm:$0xff]  ;;  %v1020_v53 = vld [vmem:[#allocation5 + $0x598] sm:$0xff] }
 0x223   : > { %1278 = vmatpush.msrb.mxu0 %v859_v5  ;;  %1298 = vmatpush.msrb.mxu1 %v923_v6  ;;  %v1051_v25 = vld [vmem:[#allocation5 + $0x690] sm:$0xff]  ;;  %v1084_v54 = vld [vmem:[#allocation5 + $0x798] sm:$0xff] }
 0x224   : > { %1315 = vmatpush.msrb.mxu2 %v999_v8  ;;  %1335 = vmatpush.msrb.mxu3 %v1063_v9  ;;  %v843_v26 = vld [vmem:[#allocation5 + $0x10] sm:$0xff]  ;;  %v876_v55 = vld [vmem:[#allocation5 + $0x118] sm:$0xff] }
 0x225   : > { %1279 = vmatpush.msrb.mxu0 %v855_v10  ;;  %1299 = vmatpush.msrb.mxu1 %v919_v11  ;;  %v907_v23 = vld [vmem:[#allocation5 + $0x210] sm:$0xff]  ;;  %v940_v56 = vld [vmem:[#allocation5 + $0x318] sm:$0xff] }
 0x226   : > { %1316 = vmatpush.msrb.mxu2 %v995_v13  ;;  %1336 = vmatpush.msrb.mxu3 %v1059_v17  ;;  %v983_v22 = vld [vmem:[#allocation5 + $0x470] sm:$0xff]  ;;  %v1016_v57 = vld [vmem:[#allocation5 + $0x578] sm:$0xff] }
 0x227   : > { %1280 = vmatpush.msrb.mxu0 %v851_v18  ;;  %1300 = vmatpush.msrb.mxu1 %v915_v19  ;;  %v1047_v4 = vld [vmem:[#allocation5 + $0x670] sm:$0xff]  ;;  %v1080_v58 = vld [vmem:[#allocation5 + $0x778] sm:$0xff] }
 0x228   : > { %1317 = vmatpush.msrb.mxu2 %v991_v7  ;;  %1337 = vmatpush.msrb.mxu3 %v1055_v24  ;;  %v979_v28 = vld [vmem:[#allocation5 + $0x450] sm:$0xff]  ;;  %v872_v59 = vld [vmem:[#allocation5 + $0xf8] sm:$0xff] }
 0x229   : > { %1281 = vmatpush.msrb.mxu0 %v847_v15  ;;  %1301 = vmatpush.msrb.mxu1 %v911_v16  ;;  %v1043_v29 = vld [vmem:[#allocation5 + $0x650] sm:$0xff]  ;;  %v936_v60 = vld [vmem:[#allocation5 + $0x2f8] sm:$0xff] }
 0x22a   : > { %1318 = vmatpush.msrb.mxu2 %v987_v21  ;;  %1338 = vmatpush.msrb.mxu3 %v1051_v25  ;;  %v975_v33 = vld [vmem:[#allocation5 + $0x430] sm:$0xff]  ;;  %v1012_v61 = vld [vmem:[#allocation5 + $0x558] sm:$0xff] }
 0x22b   : > { %1282 = vmatpush.msrb.mxu0 %v843_v26  ;;  %1302 = vmatpush.msrb.mxu1 %v907_v23  ;;  %v1039_v35 = vld [vmem:[#allocation5 + $0x630] sm:$0xff]  ;;  %v1076_v62 = vld [vmem:[#allocation5 + $0x758] sm:$0xff] }
 0x22c   : > { %1319 = vmatpush.msrb.mxu2 %v983_v22  ;;  %1339 = vmatpush.msrb.mxu3 %v1047_v4  ;;  %v971_v39 = vld [vmem:[#allocation5 + $0x410] sm:$0xff]  ;;  %v868_v63 = vld [vmem:[#allocation5 + $0xd8] sm:$0xff] }
 0x22d   : > { %1283 = vmatmul.f32.vlgmr.msrb.gmra.mxu0 %v2109_v12  ;;  %1303 = vmatmul.f32.vlgmr.msrb.gmra.mxu1 %v2114_v20  ;;  %v1035_v41 = vld [vmem:[#allocation5 + $0x610] sm:$0xff]  ;;  %v932_v1 = vld [vmem:[#allocation5 + $0x2d8] sm:$0xff] }
 0x22e   : > { %1347 = vmatpush.msra.mxu0 %v904_v0  ;;  %1367 = vmatpush.msra.mxu1 %v968_v27  ;;  %v1008_v2 = vld [vmem:[#allocation5 + $0x538] sm:$0xff] }
 0x22f   : > { %1320 = vmatpush.msrb.mxu2 %v979_v28  ;;  %1340 = vmatpush.msrb.mxu3 %v1043_v29  ;;  %v1072_v3 = vld [vmem:[#allocation5 + $0x738] sm:$0xff] }
 0x230   : > { %1348 = vmatpush.msra.mxu0 %v900_v30  ;;  %1368 = vmatpush.msra.mxu1 %v964_v31  ;;  %v864_v5 = vld [vmem:[#allocation5 + $0xb8] sm:$0xff] }
 0x231   : > { %1321 = vmatpush.msrb.mxu2 %v975_v33  ;;  %1341 = vmatpush.msrb.mxu3 %v1039_v35  ;;  %v928_v6 = vld [vmem:[#allocation5 + $0x2b8] sm:$0xff] }
 0x232   : > { %1349 = vmatpush.msra.mxu0 %v896_v36  ;;  %1369 = vmatpush.msra.mxu1 %v960_v38  ;;  %v1004_v8 = vld [vmem:[#allocation5 + $0x518] sm:$0xff] }
 0x233   : > { %1322 = vmatpush.msrb.mxu2 %v971_v39  ;;  %1342 = vmatpush.msrb.mxu3 %v1035_v41  ;;  %v1068_v9 = vld [vmem:[#allocation5 + $0x718] sm:$0xff] }
 0x234   : > { %1323 = vmatmul.f32.vlgmr.msrb.gmra.mxu2 %v2124_v34  ;;  %1343 = vmatmul.f32.vlgmr.msrb.gmra.mxu3 %v2127_v40  ;;  %v860_v10 = vld [vmem:[#allocation5 + $0x98] sm:$0xff] }
 0x235   : > { %1350 = vmatpush.msra.mxu0 %v892_v42  ;;  %1370 = vmatpush.msra.mxu1 %v956_v32  ;;  %v924_v11 = vld [vmem:[#allocation5 + $0x298] sm:$0xff] }
 0x236   : > { %1387 = vmatpush.msra.mxu2 %v1032_v37  ;;  %1407 = vmatpush.msra.mxu3 %v1096_v43  ;;  %v1000_v13 = vld [vmem:[#allocation5 + $0x4f8] sm:$0xff] }
 0x237   : > { %1351 = vmatpush.msra.mxu0 %v888_v44  ;;  %1371 = vmatpush.msra.mxu1 %v952_v14  ;;  %v1064_v17 = vld [vmem:[#allocation5 + $0x6f8] sm:$0xff] }
 0x238   : > { %1388 = vmatpush.msra.mxu2 %v1028_v45  ;;  %1408 = vmatpush.msra.mxu3 %v1092_v46  ;;  %v856_v18 = vld [vmem:[#allocation5 + $0x78] sm:$0xff] }
 0x239   : > { %1352 = vmatpush.msra.mxu0 %v884_v47  ;;  %1372 = vmatpush.msra.mxu1 %v948_v48  ;;  %v920_v19 = vld [vmem:[#allocation5 + $0x278] sm:$0xff] }
 0x23a   : > { %1389 = vmatpush.msra.mxu2 %v1024_v49  ;;  %1409 = vmatpush.msra.mxu3 %v1088_v50  ;;  %v996_v7 = vld [vmem:[#allocation5 + $0x4d8] sm:$0xff] }
 0x23b   : > { %1353 = vmatpush.msra.mxu0 %v880_v51  ;;  %1373 = vmatpush.msra.mxu1 %v944_v52  ;;  %v1060_v24 = vld [vmem:[#allocation5 + $0x6d8] sm:$0xff] }
 0x23c   : > { %1390 = vmatpush.msra.mxu2 %v1020_v53  ;;  %1410 = vmatpush.msra.mxu3 %v1084_v54  ;;  %v852_v15 = vld [vmem:[#allocation5 + $0x58] sm:$0xff] }
 0x23d   : > { %1354 = vmatpush.msra.mxu0 %v876_v55  ;;  %1374 = vmatpush.msra.mxu1 %v940_v56  ;;  %v916_v16 = vld [vmem:[#allocation5 + $0x258] sm:$0xff] }
 0x23e   : > { %1391 = vmatpush.msra.mxu2 %v1016_v57  ;;  %1411 = vmatpush.msra.mxu3 %v1080_v58  ;;  %v992_v21 = vld [vmem:[#allocation5 + $0x4b8] sm:$0xff] }
 0x23f   : > { %1355 = vmatpush.msra.mxu0 %v872_v59  ;;  %1375 = vmatpush.msra.mxu1 %v936_v60  ;;  %v1056_v25 = vld [vmem:[#allocation5 + $0x6b8] sm:$0xff] }
 0x240   : > { %1392 = vmatpush.msra.mxu2 %v1012_v61  ;;  %1412 = vmatpush.msra.mxu3 %v1076_v62  ;;  %v848_v26 = vld [vmem:[#allocation5 + $0x38] sm:$0xff] }
 0x241   : > { %1356 = vmatpush.msra.mxu0 %v868_v63  ;;  %1376 = vmatpush.msra.mxu1 %v932_v1  ;;  %v912_v23 = vld [vmem:[#allocation5 + $0x238] sm:$0xff] }
 0x242   : > { %1393 = vmatpush.msra.mxu2 %v1008_v2  ;;  %1413 = vmatpush.msra.mxu3 %v1072_v3  ;;  %v988_v22 = vld [vmem:[#allocation5 + $0x498] sm:$0xff] }
 0x243   : > { %1357 = vmatpush.msra.mxu0 %v864_v5  ;;  %1377 = vmatpush.msra.mxu1 %v928_v6  ;;  %v1052_v4 = vld [vmem:[#allocation5 + $0x698] sm:$0xff] }
 0x244   : > { %1394 = vmatpush.msra.mxu2 %v1004_v8  ;;  %1414 = vmatpush.msra.mxu3 %v1068_v9  ;;  %v844_v0 = vld [vmem:[#allocation5 + $0x18] sm:$0xff] }
 0x245   : > { %1358 = vmatpush.msra.mxu0 %v860_v10  ;;  %1378 = vmatpush.msra.mxu1 %v924_v11  ;;  %v908_v27 = vld [vmem:[#allocation5 + $0x218] sm:$0xff] }
 0x246   : > { %1395 = vmatpush.msra.mxu2 %v1000_v13  ;;  %1415 = vmatpush.msra.mxu3 %v1064_v17  ;;  %v984_v28 = vld [vmem:[#allocation5 + $0x478] sm:$0xff] }
 0x247   : > { %1359 = vmatpush.msra.mxu0 %v856_v18  ;;  %1379 = vmatpush.msra.mxu1 %v920_v19  ;;  %v1048_v29 = vld [vmem:[#allocation5 + $0x678] sm:$0xff] }
 0x248   : > { %1396 = vmatpush.msra.mxu2 %v996_v7  ;;  %1416 = vmatpush.msra.mxu3 %v1060_v24  ;;  %v980_v30 = vld [vmem:[#allocation5 + $0x458] sm:$0xff] }
 0x249   : > { %1360 = vmatpush.msra.mxu0 %v852_v15  ;;  %1380 = vmatpush.msra.mxu1 %v916_v16  ;;  %v1044_v31 = vld [vmem:[#allocation5 + $0x658] sm:$0xff] }
 0x24a   : > { %1397 = vmatpush.msra.mxu2 %v992_v21  ;;  %1417 = vmatpush.msra.mxu3 %v1056_v25  ;;  %v976_v33 = vld [vmem:[#allocation5 + $0x438] sm:$0xff] }
 0x24b   : > { %1361 = vmatpush.msra.mxu0 %v848_v26  ;;  %1381 = vmatpush.msra.mxu1 %v912_v23  ;;  %v1040_v35 = vld [vmem:[#allocation5 + $0x638] sm:$0xff] }
 0x24c   : > { %1398 = vmatpush.msra.mxu2 %v988_v22  ;;  %1418 = vmatpush.msra.mxu3 %v1052_v4  ;;  %v972_v36 = vld [vmem:[#allocation5 + $0x418] sm:$0xff] }
 0x24d   : > { %1362 = vmatpush.msra.mxu0 %v844_v0  ;;  %1382 = vmatpush.msra.mxu1 %v908_v27  ;;  %v1036_v38 = vld [vmem:[#allocation5 + $0x618] sm:$0xff] }
 0x24e   : > { %1399 = vmatpush.msra.mxu2 %v984_v28  ;;  %1419 = vmatpush.msra.mxu3 %v1048_v29 }
 0x24f   : > { %1363 = vmatmul.f32.vlgmr.msra.gmra.mxu0 %v2109_v12  ;;  %1383 = vmatmul.f32.vlgmr.msra.gmra.mxu1 %v2114_v20  ;;  %v2146_v12 = vld [vmem:[%s2200_s5] sm:$0xf] }
 0x250   : > { %1400 = vmatpush.msra.mxu2 %v980_v30  ;;  %1420 = vmatpush.msra.mxu3 %v1044_v31  ;;  %v1099_v20 = vperm.slane %v2146_v12, 0  ;;  %v1100_v43 = vperm.slane %v2146_v12, 1  ;;  %v1101_v1 = vperm.slane %v2146_v12, 2 }
 0x252   : > { %1401 = vmatpush.msra.mxu2 %v976_v33  ;;  %1421 = vmatpush.msra.mxu3 %v1040_v35  ;;  %v1102_v35 = vperm.slane %v2146_v12, 3 }
 0x254   : > { %1402 = vmatpush.msra.mxu2 %v972_v36  ;;  %1422 = vmatpush.msra.mxu3 %v1036_v38 }
 0x255   : > { %1403 = vmatmul.f32.vlgmr.msra.gmra.mxu2 %v2124_v34  ;;  %1423 = vmatmul.f32.vlgmr.msra.gmra.mxu3 %v2127_v40 }
 0x286   : > { %v1124_v39 = vpop.f32.mrf.mxu0 }
 0x287   : > { %v1125_v41 = vadd.f32 %v1124_v39, %v1099_v20  ;;  %v1144_v42 = vpop.f32.mrf.mxu1 }
 0x289   : > { %v1145_v32 = vadd.f32 %v1144_v42, %v1125_v41 }
 0x28f   : > { %v1204_v14 = vpop.f32.mrf.mxu0 }
 0x290   : > { %v1205_v46 = vadd.f32 %v1204_v14, %v1100_v43  ;;  %v1224_v47 = vpop.f32.mrf.mxu1 }
 0x292   : > { %v1225_v48 = vadd.f32 %v1224_v47, %v1205_v46 }
 0x293   : > { %v1164_v37 = vpop.f32.mrf.mxu2 }
 0x294   : > { %v1165_v44 = vadd.f32 %v1164_v37, %v1145_v32 }
 0x295   : > { %v1184_v45 = vpop.f32.mrf.mxu3 }
 0x296   : > { %v1185_v34 = vadd.f32 %v1184_v45, %v1165_v44 }
 0x298   : > { %v1629_v40 = vmul.f32 -1.442695, %v1185_v34 }
 0x29a   : > { %1727 = vpow2.f32 %v1629_v40 }
 0x29d   : > { %v1244_v49 = vpop.f32.mrf.mxu2  ;;  %v1264_v51 = vpop.f32.mrf.mxu3 }
 0x29e   : > { %v1245_v50 = vadd.f32 %v1244_v49, %v1225_v48 }
 0x2a0   : > { %v1728_v52 = vpop.eup %1727  ;;  %v1265_v53 = vadd.f32 %v1264_v51, %v1245_v50 }
 0x2a1   : > { %v1439_v54 = vadd.f32 1.0, %v1728_v52 }
 0x2a2   : > { %v1630_v55 = vmul.f32 -1.442695, %v1265_v53 }
 0x2a3   : > { %1729 = vrcp.f32 %v1439_v54  ;;  %v1454_v61 = vand.u32 2147483648, %v1439_v54  ;;  %v1452_v63 = vand.u32 2147483647, %v1439_v54  ;;  %vm1448_vm7 = vweird.f32 %v1439_v54 }
 0x2a4   : > { %1731 = vpow2.f32 %v1630_v55 }
 0x2a5   : > { %v1455_v5 = vor.u32 1.1754944e-38, %v1454_v61  ;;  %vm1453_vm9 = vcmp.eq.f32.partialorder %v1452_v63, 8.507059e+37 }
 0x2a9   : > { %v1730_v56 = vpop.eup %1729 }
 0x2aa   : > { %v1732_v57 = vpop.eup %1731  ;;  %v1444_v58 = vmul.f32 %v1730_v56, %v1439_v54  ;;  %vm1449_vm6 = vweird.f32 %v1730_v56  ;;  %v1284_v2 = vpop.f32.mrf.mxu0 }
 0x2ab   : > { %v1440_v59 = vadd.f32 1.0, %v1732_v57  ;;  %vm1450_vm8 = vmor %vm1448_vm7, %vm1449_vm6  ;;  %v1285_v8 = vadd.f32 %v1284_v2, %v1101_v1  ;;  %v1304_v17 = vpop.f32.mrf.mxu1 }
 0x2ac   : > { %v1445_v60 = vsub.f32 1.0, %v1444_v58 }
 0x2ad   : > { %1733 = vrcp.f32 %v1440_v59  ;;  %v1305_v19 = vadd.f32 %v1304_v17, %v1285_v8  ;;  %v1469_v7 = vand.u32 2147483648, %v1440_v59  ;;  %v1467_v16 = vand.u32 2147483647, %v1440_v59 }
 0x2ae   : > { %v1446_v62 = vmul.f32 %v1730_v56, %v1445_v60  ;;  %vm1463_vm11 = vweird.f32 %v1440_v59 }
 0x2af   : > { %v1470_v22 = vor.u32 1.1754944e-38, %v1469_v7  ;;  %vm1468_vm13 = vcmp.eq.f32.partialorder %v1467_v16, 8.507059e+37 }
 0x2b0   : > { %v1447_v3 = vadd.f32 %v1730_v56, %v1446_v62 }
 0x2b2   : > { %v1451_v6 = vsel %vm1450_vm8, %v1730_v56, %v1447_v3 }
 0x2b3   : > { %v1734_v9 = vpop.eup %1733  ;;  %v1456_v10 = vsel %vm1453_vm9, %v1455_v5, %v1451_v6 }
 0x2b4   : > { %v1503_v11 = vmul.f32 %v1456_v10, %v1185_v34  ;;  %v1459_v13 = vmul.f32 %v1734_v9, %v1440_v59  ;;  %vm1464_vm10 = vweird.f32 %v1734_v9 }
 0x2b5   : > { %vm1465_vm12 = vmor %vm1463_vm11, %vm1464_vm10 }
 0x2b6   : > { %1507 = vst [vmem:[%s2154_s26] sm:$0xff] %v1503_v11  ;;  %v1460_v18 = vsub.f32 1.0, %v1459_v13 }
 0x2b7   : > { %v1324_v24 = vpop.f32.mrf.mxu2  ;;  %v1344_v25 = vpop.f32.mrf.mxu3 }
 0x2b8   : > { %v1461_v15 = vmul.f32 %v1734_v9, %v1460_v18  ;;  %v1325_v21 = vadd.f32 %v1324_v24, %v1305_v19 }
 0x2ba   : > { %v1462_v26 = vadd.f32 %v1734_v9, %v1461_v15  ;;  %v1345_v23 = vadd.f32 %v1344_v25, %v1325_v21 }
 0x2bc   : > { %v1466_v4 = vsel %vm1465_vm12, %v1734_v9, %v1462_v26  ;;  %v1631_v0 = vmul.f32 -1.442695, %v1345_v23 }
 0x2bd   : > { %v1471_v27 = vsel %vm1468_vm13, %v1470_v22, %v1466_v4 }
 0x2be   : > { %v1504_v28 = vmul.f32 %v1471_v27, %v1265_v53  ;;  %1735 = vpow2.f32 %v1631_v0 }
 0x2c0   : > { %1508 = vst [vmem:[%s2154_s26 + $0x8] sm:$0xff] %v1504_v28 }
 0x2c4   : > { %v1736_v29 = vpop.eup %1735 }
 0x2c5   : > { %v1441_v30 = vadd.f32 1.0, %v1736_v29 }
 0x2c7   : > { %1737 = vrcp.f32 %v1441_v30  ;;  %v1484_v20 = vand.u32 2147483648, %v1441_v30  ;;  %v1482_v41 = vand.u32 2147483647, %v1441_v30  ;;  %vm1478_vm15 = vweird.f32 %v1441_v30 }
 0x2c9   : > { %v1485_v37 = vor.u32 1.1754944e-38, %v1484_v20  ;;  %vm1483_vm1 = vcmp.eq.f32.partialorder %v1482_v41, 8.507059e+37 }
 0x2cc   : > { %v1364_v38 = vpop.f32.mrf.mxu0  ;;  %v1384_v44 = vpop.f32.mrf.mxu1 }
 0x2cd   : > { %v1738_v31 = vpop.eup %1737  ;;  %v1365_v42 = vadd.f32 %v1364_v38, %v1102_v35 }
 0x2ce   : > { %v1474_v33 = vmul.f32 %v1738_v31, %v1441_v30  ;;  %vm1479_vm14 = vweird.f32 %v1738_v31 }
 0x2cf   : > { %vm1480_vm0 = vmor %vm1478_vm15, %vm1479_vm14  ;;  %v1385_v45 = vadd.f32 %v1384_v44, %v1365_v42 }
 0x2d0   : > { %v1475_v36 = vsub.f32 1.0, %v1474_v33 }
 0x2d2   : > { %v1476_v39 = vmul.f32 %v1738_v31, %v1475_v36 }
 0x2d4   : > { %v1477_v32 = vadd.f32 %v1738_v31, %v1476_v39 }
 0x2d6   : > { %v1481_v43 = vsel %vm1480_vm0, %v1738_v31, %v1477_v32 }
 0x2d7   : > { %v1486_v14 = vsel %vm1483_vm1, %v1485_v37, %v1481_v43 }
 0x2d8   : > { %v1505_v34 = vmul.f32 %v1486_v14, %v1345_v23  ;;  %v1404_v12 = vpop.f32.mrf.mxu2  ;;  %v1424_v40 = vpop.f32.mrf.mxu3 }
 0x2d9   : > { %v1405_v46 = vadd.f32 %v1404_v12, %v1385_v45 }
 0x2da   : > { %1509 = vst [vmem:[%s2154_s26 + $0x10] sm:$0xff] %v1505_v34 }
 0x2db   : > { %v1425_v47 = vadd.f32 %v1424_v40, %v1405_v46 }
 0x2dd   : > { %v1632_v48 = vmul.f32 -1.442695, %v1425_v47 }
 0x2df   : > { %1739 = vpow2.f32 %v1632_v48 }
 0x2e5   : > { %v1740_v49 = vpop.eup %1739 }
 0x2e6   : > { %v1442_v50 = vadd.f32 1.0, %v1740_v49 }
 0x2e8   : > { %1741 = vrcp.f32 %v1442_v50  ;;  %v1499_v54 = vand.u32 2147483648, %v1442_v50  ;;  %v1497_v56 = vand.u32 2147483647, %v1442_v50  ;;  %vm1493_vm3 = vweird.f32 %v1442_v50 }
 0x2ea   : > { %v1500_v58 = vor.u32 1.1754944e-38, %v1499_v54  ;;  %vm1498_vm5 = vcmp.eq.f32.partialorder %v1497_v56, 8.507059e+37 }
 0x2ee   : > { %v1742_v51 = vpop.eup %1741 }
 0x2ef   : > { %v1489_v52 = vmul.f32 %v1742_v51, %v1442_v50  ;;  %vm1494_vm2 = vweird.f32 %v1742_v51 }
 0x2f0   : > { %vm1495_vm4 = vmor %vm1493_vm3, %vm1494_vm2 }
 0x2f1   : > { %v1490_v53 = vsub.f32 1.0, %v1489_v52 }
 0x2f3   : > { %v1491_v55 = vmul.f32 %v1742_v51, %v1490_v53 }
 0x2f5   : > { %v1492_v57 = vadd.f32 %v1742_v51, %v1491_v55 }
 0x2f7   : > { %v1496_v59 = vsel %vm1495_vm4, %v1742_v51, %v1492_v57 }
 0x2f8   : > { %v1501_v60 = vsel %vm1498_vm5, %v1500_v58, %v1496_v59 }
 0x2f9   : > { %v1506_v61 = vmul.f32 %v1501_v60, %v1425_v47 }
 0x2fb   : > { %1510 = vst [vmem:[%s2154_s26 + $0x18] sm:$0xff] %v1506_v61 }
 0x2fc   : > { %1830 = shalt.err (!%p1827_p8)
}
 0x2fd   : > { %1647 = dma.vmem_to_hbm [thread:$0]  (%p1960_p5), %s1526_s11, 512, %s1528_s12, %s1512_s25  }
 0x2fe PF: > { %p1664_p9 = scmp.ge.s32.totalorder %s1873_s24, 2  ;;  %s1539_s19 = sand.u32 1, %s1861_s21  }
 0x2ff   : > { %s1540_s26 = scalar_lea.sflag [#allocation4], %s1539_s19 }
 0x300   : > { %p1657_p10 = pnand %p1664_p9, %p1964_p6 }
 0x302   : > { %p1658_p11 = pneg %p1657_p10 }
 0x304   : > { %1856 = dma.done.wait (%p1658_p11), %s1540_s26, 512  }
 0x305   : > { %1858 = vsyncadd (%p1658_p11), %s1540_s26, 4294966784  ;;  %p18_p12 = scmp.ge.s32.totalorder %s1947_s27, 4   ;;  %s2207_s21 = smov %s1865_s22 }
 0x306   : > { %s2208_s22 = smov %s1869_s23  ;;  %s2209_s23 = smov %s1958_s30 }
 0x307   : > { %s2210_s24 = smov %s1947_s27  ;;  %20 = sbr.rel (!%p18_p12) target bundleno = 5 (0x5), region = 88 }
 0x30c   :  { %1546 = vsyncpa [#allocation3], 1 }
 0x30d   :  { %1548 = vsyncpa [#allocation3 + $0x1], 1 }
 0x30e   :  { %1549 = vsyncpa [#allocation6], 1 }
 0x30f   :  { %1550 = vsyncpa [#allocation4], 1 }
 0x310   :  { %1552 = vsyncpa [#allocation4 + $0x1], 1 }

</bundles_post_ra>
